<compile_context>
chip_gen: v7x
topology: tpu7x:2x2x1
jax: 0.10.0
libtpu: 0.0.40
codegen_flags: <defaults>
</compile_context>

<pallas_src>
import jax
import jax.numpy as jnp
import numpy as np
from jax.experimental import pallas as pl
from jax.experimental.pallas import tpu as pltpu

# ---- small OPT-like config --------------------------------------------------
B, S, H = 2, 8, 32          # batch, seq, hidden_size
NUM_HEADS = 4
HEAD_DIM = H // NUM_HEADS
FFN = 4 * H                 # ffn_dim
NUM_LAYERS = 2              # `num` in FTOPTDecoderLayers
LN_EPS = 1e-5
N = B * S                   # total tokens carried as (N, H)

# ---- packed-blob layout ------------------------------------------------------
W_LANES = 128                                  # lane width of the bf16 weight blob
assert 3 * H <= W_LANES and FFN == W_LANES     # toy config; see scaling TODO above
assert H % 16 == 0 and FFN % 16 == 0           # bf16 sublane-tile aligned row slices
OFF_WQKV = 0                # (H, 3H)  q-scale folded, zero-padded to W_LANES lanes
OFF_W1 = H                  # (H, FFN)
OFF_W2 = 2 * H              # (FFN, H) zero-padded to W_LANES lanes
OFF_WO = 2 * H + FFN        # (H, H)   zero-padded to W_LANES lanes
W_ROWS_PER_LAYER = 3 * H + FFN
VW_ROWS_PER_LAYER = 2       # rows: bqkv (q-scale folded), b1      -- f32, 128 lanes
VN_ROWS_PER_LAYER = 6       # rows: ln1g, ln1b, bo, ln2g, ln2b, b2 -- f32, H lanes


def _layernorm(x, g, b):
    mu = jnp.mean(x, axis=-1, keepdims=True)
    var = jnp.mean(jnp.square(x - mu), axis=-1, keepdims=True)
    return (x - mu) * jax.lax.rsqrt(var + LN_EPS) * g + b


# ---- Pallas kernel: whole stack of decoder layers in one invocation ----------
def opt_layers_kernel(x_ref, w_ref, vw_ref, vn_ref, out_ref):
    h = x_ref[...].astype(jnp.float32)                     # (N, H) residual stream

    # Batch-block mask generated in-kernel (no mask input DMA), hoisted out of
    # the layer loop.  Multiplicative-after-exp is safe here because every row
    # has >= S unmasked keys.
    # TODO(synk): switch to an additive -inf mask if causal/padding masks are added.
    r = jax.lax.broadcasted_iota(jnp.int32, (N, N), 0)
    c = jax.lax.broadcasted_iota(jnp.int32, (N, N), 1)
    if S & (S - 1) == 0:
        sh = S.bit_length() - 1
        rb, cb = r >> sh, c >> sh
    else:
        rb, cb = r // S, c // S
    same = (rb == cb).astype(jnp.float32)                  # (N, N) 1.0 = same batch row

    # Per-head lane masks over the H hidden lanes (hoisted).
    lane = jax.lax.broadcasted_iota(jnp.int32, (1, H), 1)
    head_masks = [
        ((lane >= hh * HEAD_DIM) & (lane < (hh + 1) * HEAD_DIM)).astype(jnp.float32)
        for hh in range(NUM_HEADS)
    ]

    # Static unroll over layers (weights VMEM-resident at this toy size).
    for l in range(NUM_LAYERS):
        wb = l * W_ROWS_PER_LAYER
        wqkv = w_ref[pl.ds(wb + OFF_WQKV, H), :]            # (H, 128) bf16
        w1 = w_ref[pl.ds(wb + OFF_W1, H), :]                # (H, FFN) bf16
        w2 = w_ref[pl.ds(wb + OFF_W2, FFN), :]              # (FFN, 128) bf16
        wo = w_ref[pl.ds(wb + OFF_WO, H), :]                # (H, 128) bf16
        vwb = l * VW_ROWS_PER_LAYER
        bqkv = vw_ref[pl.ds(vwb + 0, 1), :]                  # (1, 128) f32
        b1 = vw_ref[pl.ds(vwb + 1, 1), :]                    # (1, 128) f32
        vnb = l * VN_ROWS_PER_LAYER
        ln1g = vn_ref[pl.ds(vnb + 0, 1), :]                  # (1, H) f32
        ln1b = vn_ref[pl.ds(vnb + 1, 1), :]
        bo = vn_ref[pl.ds(vnb + 2, 1), :]
        ln2g = vn_ref[pl.ds(vnb + 3, 1), :]
        ln2b = vn_ref[pl.ds(vnb + 4, 1), :]
        b2 = vn_ref[pl.ds(vnb + 5, 1), :]

        # ---------------- self-attention block (pre-LayerNorm) ----------------
        xn = _layernorm(h, ln1g, ln1b).astype(jnp.bfloat16)            # (N, H)
        qkv = jnp.dot(xn, wqkv, preferred_element_type=jnp.float32) + bqkv  # (N, 128)
        q = qkv[:, 0 * H:1 * H]            # scale already folded into wqkv/bqkv
        k = qkv[:, 1 * H:2 * H]
        v = qkv[:, 2 * H:3 * H]

        # Per-head attention with 2-D lane-dense matmuls (no (NH, N, HD) tensors).
        ctx = None
        for hm in head_masks:
            sc = jax.lax.dot_general(q * hm, k, (((1,), (1,)), ((), ())),
                                     preferred_element_type=jnp.float32)   # (N, N)
            sc = sc - jnp.max(sc, axis=-1, keepdims=True)
            p = jnp.exp(sc) * same                                          # zero cross-batch
            p = p * pl.reciprocal(jnp.sum(p, axis=-1, keepdims=True), approx=True)
            part = jnp.dot(p, v * hm, preferred_element_type=jnp.float32)   # (N, H), head lanes only
            ctx = part if ctx is None else ctx + part

        proj = jnp.dot(ctx.astype(jnp.bfloat16), wo,
                       preferred_element_type=jnp.float32)                  # (N, 128)
        h = h + proj[:, 0:H] + bo                                           # residual (f32)

        # ---------------- feed-forward block (pre-LayerNorm) ------------------
        xn = _layernorm(h, ln2g, ln2b).astype(jnp.bfloat16)
        f = jnp.maximum(jnp.dot(xn, w1, preferred_element_type=jnp.float32) + b1, 0.0)
        y = jnp.dot(f.astype(jnp.bfloat16), w2, preferred_element_type=jnp.float32)
        h = h + y[:, 0:H] + b2                                              # residual (f32)

    out_ref[...] = h.astype(out_ref.dtype)


# ---- wrapper -----------------------------------------------------------------
def ft_opt_decoder_layers(hidden_states, wblob, vwblob, vnblob):
    x2d = hidden_states.reshape(N, H).astype(jnp.float32)
    out = pl.pallas_call(
        opt_layers_kernel,
        out_shape=jax.ShapeDtypeStruct((N, H), jnp.float32),
        in_specs=[pl.BlockSpec(memory_space=pltpu.MemorySpace.VMEM)] * 4,
        out_specs=pl.BlockSpec(memory_space=pltpu.MemorySpace.VMEM),
        compiler_params=pltpu.CompilerParams(vmem_limit_bytes=32 * 1024 * 1024),
    )(x2d, wblob, vwblob, vnblob)
    return out.reshape(B, S, H)


# ---- deterministic parameter init (PyTorch nn.Linear convention) -------------
def init_torch_style_params(key):
    keys = iter(jax.random.split(key, 64))

    def nrm(shape):
        return 0.02 * jax.random.normal(next(keys), shape, jnp.float32)

    layers = []
    for _ in range(NUM_LAYERS):
        layers.append(dict(
            ln1g=1.0 + 0.1 * jax.random.normal(next(keys), (H,), jnp.float32),
            ln1b=0.1 * jax.random.normal(next(keys), (H,), jnp.float32),
            wq=nrm((H, H)), bq=nrm((H,)),
            wk=nrm((H, H)), bk=nrm((H,)),
            wv=nrm((H, H)), bv=nrm((H,)),
            wo=nrm((H, H)), bo=nrm((H,)),
            ln2g=1.0 + 0.1 * jax.random.normal(next(keys), (H,), jnp.float32),
            ln2b=0.1 * jax.random.normal(next(keys), (H,), jnp.float32),
            w1=nrm((FFN, H)), b1=nrm((FFN,)),
            w2=nrm((H, FFN)), b2=nrm((H,)),
        ))
    return layers


def pack_kernel_params(layers):
    """Pack all layers into 3 contiguous blobs (host-side, one-time):
       - bf16 weight blob (L*W_ROWS_PER_LAYER, 128), pre-transposed to (in,out),
         QKV fused with the attention scale folded into the Q part, zero-padded
         to 128 lanes;
       - f32 wide-bias blob  (L*2, 128): [bqkv(scaled q-part), b1];
       - f32 narrow-vec blob (L*6, H):  [ln1g, ln1b, bo, ln2g, ln2b, b2]."""
    scale = HEAD_DIM ** -0.5
    w_rows, vw_rows, vn_rows = [], [], []
    for p in layers:
        wqkv = jnp.concatenate([p["wq"].T * scale, p["wk"].T, p["wv"].T], axis=1)  # (H, 3H)
        wqkv = jnp.pad(wqkv, ((0, 0), (0, W_LANES - 3 * H)))                       # (H, 128)
        w1t = p["w1"].T                                                            # (H, FFN)
        w2t = jnp.pad(p["w2"].T, ((0, 0), (0, W_LANES - H)))                       # (FFN, 128)
        wot = jnp.pad(p["wo"].T, ((0, 0), (0, W_LANES - H)))                       # (H, 128)
        w_rows += [wqkv, w1t, w2t, wot]

        bqkv = jnp.concatenate([p["bq"] * scale, p["bk"], p["bv"]])
        bqkv = jnp.pad(bqkv, (0, W_LANES - 3 * H))
        vw_rows += [bqkv[None, :], p["b1"][None, :]]
        vn_rows += [p["ln1g"][None, :], p["ln1b"][None, :], p["bo"][None, :],
                    p["ln2g"][None, :], p["ln2b"][None, :], p["b2"][None, :]]

    wblob = jnp.concatenate(w_rows, axis=0).astype(jnp.bfloat16)   # (L*224, 128)
    vwblob = jnp.concatenate(vw_rows, axis=0).astype(jnp.float32)  # (L*2, 128)
    vnblob = jnp.concatenate(vn_rows, axis=0).astype(jnp.float32)  # (L*6, H)
    return wblob, vwblob, vnblob


# ---- pure-JAX f32 reference (PyTorch-convention math) -------------------------
def reference(x, layers):
    h = x.astype(jnp.float32)
    scale = HEAD_DIM ** -0.5
    for p in layers:
        res = h
        xn = _layernorm(h, p["ln1g"], p["ln1b"])
        q = (xn @ p["wq"].T + p["bq"]) * scale
        k = xn @ p["wk"].T + p["bk"]
        v = xn @ p["wv"].T + p["bv"]

        def sh(t):
            return t.reshape(B, S, NUM_HEADS, HEAD_DIM).transpose(0, 2, 1, 3)

        qh, kh, vh = sh(q), sh(k), sh(v)
        sc = jnp.einsum('bhqd,bhkd->bhqk', qh, kh)
        pr = jax.nn.softmax(sc, axis=-1)
        ctx = jnp.einsum('bhqk,bhkd->bhqd', pr, vh)
        ctx = ctx.transpose(0, 2, 1, 3).reshape(B, S, H)
        h = res + (ctx @ p["wo"].T + p["bo"])

        res = h
        xn = _layernorm(h, p["ln2g"], p["ln2b"])
        f = jax.nn.relu(xn @ p["w1"].T + p["b1"])
        h = res + (f @ p["w2"].T + p["b2"])
    return h


if __name__ == "__main__":
    key = jax.random.PRNGKey(0)
    kx, kp = jax.random.split(key)
    hidden_states = jax.random.normal(kx, (B, S, H), jnp.float32)

    layers = init_torch_style_params(kp)
    wblob, vwblob, vnblob = pack_kernel_params(layers)

    out = jax.block_until_ready(ft_opt_decoder_layers(hidden_states, wblob, vwblob, vnblob))
    ref = jax.block_until_ready(reference(hidden_states, layers))

    # bf16 MXU operands on the weight matmuls + approx reciprocal (f32 accumulation elsewhere)
    np.testing.assert_allclose(np.asarray(out), np.asarray(ref), rtol=2e-2, atol=2e-2)
    print("KERNEL_OK")
</pallas_src>

<mosaic_0001>
module attributes {stable_mosaic.version = 11 : i64} {
  func.func @opt_layers_kernel(%arg0: memref<16x32xf32, #tpu.memory_space<vmem>>, %arg1: memref<448x128xbf16, #tpu.memory_space<vmem>>, %arg2: memref<4x128xf32, #tpu.memory_space<vmem>>, %arg3: memref<12x32xf32, #tpu.memory_space<vmem>>, %arg4: memref<16x32xf32, #tpu.memory_space<vmem>>) attributes {dimension_semantics = [], scalar_prefetch = 0 : i64, scratch_operands = 0 : i64, tpu.core_type = #tpu.core_type<tc>} {
    %c0 = arith.constant 0 : index
    %c0_0 = arith.constant 0 : index
    %0 = vector.load %arg0[%c0, %c0_0] : memref<16x32xf32, #tpu.memory_space<vmem>>, vector<16x32xf32>
    %1 = tpu.iota {dimensions = array<i32: 0>} : vector<16x16xi32>
    %2 = tpu.iota {dimensions = array<i32: 1>} : vector<16x16xi32>
    %c3_i32 = arith.constant 3 : i32
    %3 = vector.broadcast %c3_i32 : i32 to vector<16x16xi32>
    %4 = arith.shrsi %1, %3 : vector<16x16xi32>
    %c3_i32_1 = arith.constant 3 : i32
    %5 = vector.broadcast %c3_i32_1 : i32 to vector<16x16xi32>
    %6 = arith.shrsi %2, %5 : vector<16x16xi32>
    %7 = arith.cmpi eq, %4, %6 : vector<16x16xi32>
    %8 = arith.extui %7 : vector<16x16xi1> to vector<16x16xi32>
    %9 = arith.sitofp %8 : vector<16x16xi32> to vector<16x16xf32>
    %10 = tpu.iota {dimensions = array<i32: 1>} : vector<1x32xi32>
    %c0_i32 = arith.constant 0 : i32
    %11 = vector.broadcast %c0_i32 : i32 to vector<1x32xi32>
    %12 = arith.cmpi sge, %10, %11 : vector<1x32xi32>
    %c8_i32 = arith.constant 8 : i32
    %13 = vector.broadcast %c8_i32 : i32 to vector<1x32xi32>
    %14 = arith.cmpi slt, %10, %13 : vector<1x32xi32>
    %15 = arith.andi %12, %14 : vector<1x32xi1>
    %16 = arith.extui %15 : vector<1x32xi1> to vector<1x32xi32>
    %17 = arith.sitofp %16 : vector<1x32xi32> to vector<1x32xf32>
    %c8_i32_2 = arith.constant 8 : i32
    %18 = vector.broadcast %c8_i32_2 : i32 to vector<1x32xi32>
    %19 = arith.cmpi sge, %10, %18 : vector<1x32xi32>
    %c16_i32 = arith.constant 16 : i32
    %20 = vector.broadcast %c16_i32 : i32 to vector<1x32xi32>
    %21 = arith.cmpi slt, %10, %20 : vector<1x32xi32>
    %22 = arith.andi %19, %21 : vector<1x32xi1>
    %23 = arith.extui %22 : vector<1x32xi1> to vector<1x32xi32>
    %24 = arith.sitofp %23 : vector<1x32xi32> to vector<1x32xf32>
    %c16_i32_3 = arith.constant 16 : i32
    %25 = vector.broadcast %c16_i32_3 : i32 to vector<1x32xi32>
    %26 = arith.cmpi sge, %10, %25 : vector<1x32xi32>
    %c24_i32 = arith.constant 24 : i32
    %27 = vector.broadcast %c24_i32 : i32 to vector<1x32xi32>
    %28 = arith.cmpi slt, %10, %27 : vector<1x32xi32>
    %29 = arith.andi %26, %28 : vector<1x32xi1>
    %30 = arith.extui %29 : vector<1x32xi1> to vector<1x32xi32>
    %31 = arith.sitofp %30 : vector<1x32xi32> to vector<1x32xf32>
    %c24_i32_4 = arith.constant 24 : i32
    %32 = vector.broadcast %c24_i32_4 : i32 to vector<1x32xi32>
    %33 = arith.cmpi sge, %10, %32 : vector<1x32xi32>
    %c32_i32 = arith.constant 32 : i32
    %34 = vector.broadcast %c32_i32 : i32 to vector<1x32xi32>
    %35 = arith.cmpi slt, %10, %34 : vector<1x32xi32>
    %36 = arith.andi %33, %35 : vector<1x32xi1>
    %37 = arith.extui %36 : vector<1x32xi1> to vector<1x32xi32>
    %38 = arith.sitofp %37 : vector<1x32xi32> to vector<1x32xf32>
    %c0_5 = arith.constant 0 : index
    %c0_6 = arith.constant 0 : index
    %39 = vector.load %arg1[%c0_5, %c0_6] : memref<448x128xbf16, #tpu.memory_space<vmem>>, vector<32x128xbf16>
    %c32 = arith.constant 32 : index
    %c0_7 = arith.constant 0 : index
    %40 = vector.load %arg1[%c32, %c0_7] : memref<448x128xbf16, #tpu.memory_space<vmem>>, vector<32x128xbf16>
    %c64 = arith.constant 64 : index
    %c0_8 = arith.constant 0 : index
    %41 = vector.load %arg1[%c64, %c0_8] : memref<448x128xbf16, #tpu.memory_space<vmem>>, vector<128x128xbf16>
    %c192 = arith.constant 192 : index
    %c0_9 = arith.constant 0 : index
    %42 = vector.load %arg1[%c192, %c0_9] : memref<448x128xbf16, #tpu.memory_space<vmem>>, vector<32x128xbf16>
    %c0_10 = arith.constant 0 : index
    %c0_11 = arith.constant 0 : index
    %43 = vector.load %arg2[%c0_10, %c0_11] : memref<4x128xf32, #tpu.memory_space<vmem>>, vector<1x128xf32>
    %c1 = arith.constant 1 : index
    %c0_12 = arith.constant 0 : index
    %44 = vector.load %arg2[%c1, %c0_12] : memref<4x128xf32, #tpu.memory_space<vmem>>, vector<1x128xf32>
    %c0_13 = arith.constant 0 : index
    %c0_14 = arith.constant 0 : index
    %45 = vector.load %arg3[%c0_13, %c0_14] : memref<12x32xf32, #tpu.memory_space<vmem>>, vector<1x32xf32>
    %c1_15 = arith.constant 1 : index
    %c0_16 = arith.constant 0 : index
    %46 = vector.load %arg3[%c1_15, %c0_16] : memref<12x32xf32, #tpu.memory_space<vmem>>, vector<1x32xf32>
    %c2 = arith.constant 2 : index
    %c0_17 = arith.constant 0 : index
    %47 = vector.load %arg3[%c2, %c0_17] : memref<12x32xf32, #tpu.memory_space<vmem>>, vector<1x32xf32>
    %c3 = arith.constant 3 : index
    %c0_18 = arith.constant 0 : index
    %48 = vector.load %arg3[%c3, %c0_18] : memref<12x32xf32, #tpu.memory_space<vmem>>, vector<1x32xf32>
    %c4 = arith.constant 4 : index
    %c0_19 = arith.constant 0 : index
    %49 = vector.load %arg3[%c4, %c0_19] : memref<12x32xf32, #tpu.memory_space<vmem>>, vector<1x32xf32>
    %c5 = arith.constant 5 : index
    %c0_20 = arith.constant 0 : index
    %50 = vector.load %arg3[%c5, %c0_20] : memref<12x32xf32, #tpu.memory_space<vmem>>, vector<1x32xf32>
    %cst = arith.constant dense<0.000000e+00> : vector<16xf32>
    %51 = vector.multi_reduction <add>, %0, %cst [1] : vector<16x32xf32> to vector<16xf32>
    %52 = vector.shape_cast %51 : vector<16xf32> to vector<16x1xf32>
    %cst_21 = arith.constant 3.200000e+01 : f32
    %53 = vector.broadcast %cst_21 : f32 to vector<16x1xf32>
    %54 = arith.divf %52, %53 : vector<16x1xf32>
    %55 = vector.broadcast %54 : vector<16x1xf32> to vector<16x32xf32>
    %56 = arith.subf %0, %55 : vector<16x32xf32>
    %57 = arith.mulf %56, %56 : vector<16x32xf32>
    %cst_22 = arith.constant dense<0.000000e+00> : vector<16xf32>
    %58 = vector.multi_reduction <add>, %57, %cst_22 [1] : vector<16x32xf32> to vector<16xf32>
    %59 = vector.shape_cast %58 : vector<16xf32> to vector<16x1xf32>
    %cst_23 = arith.constant 3.200000e+01 : f32
    %60 = vector.broadcast %cst_23 : f32 to vector<16x1xf32>
    %61 = arith.divf %59, %60 : vector<16x1xf32>
    %62 = vector.broadcast %54 : vector<16x1xf32> to vector<16x32xf32>
    %63 = arith.subf %0, %62 : vector<16x32xf32>
    %cst_24 = arith.constant 9.99999974E-6 : f32
    %64 = vector.broadcast %cst_24 : f32 to vector<16x1xf32>
    %65 = arith.addf %61, %64 : vector<16x1xf32>
    %66 = math.rsqrt %65 : vector<16x1xf32>
    %67 = vector.broadcast %66 : vector<16x1xf32> to vector<16x32xf32>
    %68 = arith.mulf %63, %67 : vector<16x32xf32>
    %69 = vector.broadcast %45 : vector<1x32xf32> to vector<16x32xf32>
    %70 = arith.mulf %68, %69 : vector<16x32xf32>
    %71 = vector.broadcast %46 : vector<1x32xf32> to vector<16x32xf32>
    %72 = arith.addf %70, %71 : vector<16x32xf32>
    %73 = arith.truncf %72 : vector<16x32xf32> to vector<16x32xbf16>
    %cst_25 = arith.constant dense<0.000000e+00> : vector<16x128xf32>
    %74 = tpu.matmul %73, %39, %cst_25 {dimension_numbers = #tpu.dot_dimension_numbers<[1], [0], [0], [1], [0, 0, 1, 1], [], []>} : vector<16x32xbf16>, vector<32x128xbf16>, vector<16x128xf32> -> vector<16x128xf32>
    %75 = vector.broadcast %43 : vector<1x128xf32> to vector<16x128xf32>
    %76 = arith.addf %74, %75 : vector<16x128xf32>
    %77 = vector.extract_strided_slice %76 {offsets = [0, 0], sizes = [16, 32], strides = [1, 1]} : vector<16x128xf32> to vector<16x32xf32>
    %78 = vector.extract_strided_slice %76 {offsets = [0, 32], sizes = [16, 32], strides = [1, 1]} : vector<16x128xf32> to vector<16x32xf32>
    %79 = vector.extract_strided_slice %76 {offsets = [0, 64], sizes = [16, 32], strides = [1, 1]} : vector<16x128xf32> to vector<16x32xf32>
    %80 = vector.broadcast %17 : vector<1x32xf32> to vector<16x32xf32>
    %81 = arith.mulf %77, %80 : vector<16x32xf32>
    %cst_26 = arith.constant dense<0.000000e+00> : vector<16x16xf32>
    %82 = tpu.matmul %81, %78, %cst_26 {dimension_numbers = #tpu.dot_dimension_numbers<[1], [1], [0], [0], [0, 0, 1, 0], [], []>} : vector<16x32xf32>, vector<16x32xf32>, vector<16x16xf32> -> vector<16x16xf32>
    %cst_27 = arith.constant dense<0xFF800000> : vector<16xf32>
    %83 = vector.multi_reduction <maximumf>, %82, %cst_27 [1] : vector<16x16xf32> to vector<16xf32>
    %84 = vector.shape_cast %83 : vector<16xf32> to vector<16x1xf32>
    %85 = vector.broadcast %84 : vector<16x1xf32> to vector<16x16xf32>
    %86 = arith.subf %82, %85 : vector<16x16xf32>
    %87 = math.exp %86 : vector<16x16xf32>
    %88 = arith.mulf %87, %9 : vector<16x16xf32>
    %cst_28 = arith.constant dense<0.000000e+00> : vector<16xf32>
    %89 = vector.multi_reduction <add>, %88, %cst_28 [1] : vector<16x16xf32> to vector<16xf32>
    %90 = vector.shape_cast %89 : vector<16xf32> to vector<16x1xf32>
    %91 = tpu.reciprocal %90 {approx = true} : vector<16x1xf32> -> vector<16x1xf32>
    %92 = vector.broadcast %91 : vector<16x1xf32> to vector<16x16xf32>
    %93 = arith.mulf %88, %92 : vector<16x16xf32>
    %94 = vector.broadcast %17 : vector<1x32xf32> to vector<16x32xf32>
    %95 = arith.mulf %79, %94 : vector<16x32xf32>
    %cst_29 = arith.constant dense<0.000000e+00> : vector<16x32xf32>
    %96 = tpu.matmul %93, %95, %cst_29 {dimension_numbers = #tpu.dot_dimension_numbers<[1], [0], [0], [1], [0, 0, 1, 1], [], []>} : vector<16x16xf32>, vector<16x32xf32>, vector<16x32xf32> -> vector<16x32xf32>
    %97 = vector.broadcast %24 : vector<1x32xf32> to vector<16x32xf32>
    %98 = arith.mulf %77, %97 : vector<16x32xf32>
    %cst_30 = arith.constant dense<0.000000e+00> : vector<16x16xf32>
    %99 = tpu.matmul %98, %78, %cst_30 {dimension_numbers = #tpu.dot_dimension_numbers<[1], [1], [0], [0], [0, 0, 1, 0], [], []>} : vector<16x32xf32>, vector<16x32xf32>, vector<16x16xf32> -> vector<16x16xf32>
    %cst_31 = arith.constant dense<0xFF800000> : vector<16xf32>
    %100 = vector.multi_reduction <maximumf>, %99, %cst_31 [1] : vector<16x16xf32> to vector<16xf32>
    %101 = vector.shape_cast %100 : vector<16xf32> to vector<16x1xf32>
    %102 = vector.broadcast %101 : vector<16x1xf32> to vector<16x16xf32>
    %103 = arith.subf %99, %102 : vector<16x16xf32>
    %104 = math.exp %103 : vector<16x16xf32>
    %105 = arith.mulf %104, %9 : vector<16x16xf32>
    %cst_32 = arith.constant dense<0.000000e+00> : vector<16xf32>
    %106 = vector.multi_reduction <add>, %105, %cst_32 [1] : vector<16x16xf32> to vector<16xf32>
    %107 = vector.shape_cast %106 : vector<16xf32> to vector<16x1xf32>
    %108 = tpu.reciprocal %107 {approx = true} : vector<16x1xf32> -> vector<16x1xf32>
    %109 = vector.broadcast %108 : vector<16x1xf32> to vector<16x16xf32>
    %110 = arith.mulf %105, %109 : vector<16x16xf32>
    %111 = vector.broadcast %24 : vector<1x32xf32> to vector<16x32xf32>
    %112 = arith.mulf %79, %111 : vector<16x32xf32>
    %cst_33 = arith.constant dense<0.000000e+00> : vector<16x32xf32>
    %113 = tpu.matmul %110, %112, %cst_33 {dimension_numbers = #tpu.dot_dimension_numbers<[1], [0], [0], [1], [0, 0, 1, 1], [], []>} : vector<16x16xf32>, vector<16x32xf32>, vector<16x32xf32> -> vector<16x32xf32>
    %114 = arith.addf %96, %113 : vector<16x32xf32>
    %115 = vector.broadcast %31 : vector<1x32xf32> to vector<16x32xf32>
    %116 = arith.mulf %77, %115 : vector<16x32xf32>
    %cst_34 = arith.constant dense<0.000000e+00> : vector<16x16xf32>
    %117 = tpu.matmul %116, %78, %cst_34 {dimension_numbers = #tpu.dot_dimension_numbers<[1], [1], [0], [0], [0, 0, 1, 0], [], []>} : vector<16x32xf32>, vector<16x32xf32>, vector<16x16xf32> -> vector<16x16xf32>
    %cst_35 = arith.constant dense<0xFF800000> : vector<16xf32>
    %118 = vector.multi_reduction <maximumf>, %117, %cst_35 [1] : vector<16x16xf32> to vector<16xf32>
    %119 = vector.shape_cast %118 : vector<16xf32> to vector<16x1xf32>
    %120 = vector.broadcast %119 : vector<16x1xf32> to vector<16x16xf32>
    %121 = arith.subf %117, %120 : vector<16x16xf32>
    %122 = math.exp %121 : vector<16x16xf32>
    %123 = arith.mulf %122, %9 : vector<16x16xf32>
    %cst_36 = arith.constant dense<0.000000e+00> : vector<16xf32>
    %124 = vector.multi_reduction <add>, %123, %cst_36 [1] : vector<16x16xf32> to vector<16xf32>
    %125 = vector.shape_cast %124 : vector<16xf32> to vector<16x1xf32>
    %126 = tpu.reciprocal %125 {approx = true} : vector<16x1xf32> -> vector<16x1xf32>
    %127 = vector.broadcast %126 : vector<16x1xf32> to vector<16x16xf32>
    %128 = arith.mulf %123, %127 : vector<16x16xf32>
    %129 = vector.broadcast %31 : vector<1x32xf32> to vector<16x32xf32>
    %130 = arith.mulf %79, %129 : vector<16x32xf32>
    %cst_37 = arith.constant dense<0.000000e+00> : vector<16x32xf32>
    %131 = tpu.matmul %128, %130, %cst_37 {dimension_numbers = #tpu.dot_dimension_numbers<[1], [0], [0], [1], [0, 0, 1, 1], [], []>} : vector<16x16xf32>, vector<16x32xf32>, vector<16x32xf32> -> vector<16x32xf32>
    %132 = arith.addf %114, %131 : vector<16x32xf32>
    %133 = vector.broadcast %38 : vector<1x32xf32> to vector<16x32xf32>
    %134 = arith.mulf %77, %133 : vector<16x32xf32>
    %cst_38 = arith.constant dense<0.000000e+00> : vector<16x16xf32>
    %135 = tpu.matmul %134, %78, %cst_38 {dimension_numbers = #tpu.dot_dimension_numbers<[1], [1], [0], [0], [0, 0, 1, 0], [], []>} : vector<16x32xf32>, vector<16x32xf32>, vector<16x16xf32> -> vector<16x16xf32>
    %cst_39 = arith.constant dense<0xFF800000> : vector<16xf32>
    %136 = vector.multi_reduction <maximumf>, %135, %cst_39 [1] : vector<16x16xf32> to vector<16xf32>
    %137 = vector.shape_cast %136 : vector<16xf32> to vector<16x1xf32>
    %138 = vector.broadcast %137 : vector<16x1xf32> to vector<16x16xf32>
    %139 = arith.subf %135, %138 : vector<16x16xf32>
    %140 = math.exp %139 : vector<16x16xf32>
    %141 = arith.mulf %140, %9 : vector<16x16xf32>
    %cst_40 = arith.constant dense<0.000000e+00> : vector<16xf32>
    %142 = vector.multi_reduction <add>, %141, %cst_40 [1] : vector<16x16xf32> to vector<16xf32>
    %143 = vector.shape_cast %142 : vector<16xf32> to vector<16x1xf32>
    %144 = tpu.reciprocal %143 {approx = true} : vector<16x1xf32> -> vector<16x1xf32>
    %145 = vector.broadcast %144 : vector<16x1xf32> to vector<16x16xf32>
    %146 = arith.mulf %141, %145 : vector<16x16xf32>
    %147 = vector.broadcast %38 : vector<1x32xf32> to vector<16x32xf32>
    %148 = arith.mulf %79, %147 : vector<16x32xf32>
    %cst_41 = arith.constant dense<0.000000e+00> : vector<16x32xf32>
    %149 = tpu.matmul %146, %148, %cst_41 {dimension_numbers = #tpu.dot_dimension_numbers<[1], [0], [0], [1], [0, 0, 1, 1], [], []>} : vector<16x16xf32>, vector<16x32xf32>, vector<16x32xf32> -> vector<16x32xf32>
    %150 = arith.addf %132, %149 : vector<16x32xf32>
    %151 = arith.truncf %150 : vector<16x32xf32> to vector<16x32xbf16>
    %cst_42 = arith.constant dense<0.000000e+00> : vector<16x128xf32>
    %152 = tpu.matmul %151, %42, %cst_42 {dimension_numbers = #tpu.dot_dimension_numbers<[1], [0], [0], [1], [0, 0, 1, 1], [], []>} : vector<16x32xbf16>, vector<32x128xbf16>, vector<16x128xf32> -> vector<16x128xf32>
    %153 = vector.extract_strided_slice %152 {offsets = [0, 0], sizes = [16, 32], strides = [1, 1]} : vector<16x128xf32> to vector<16x32xf32>
    %154 = arith.addf %0, %153 : vector<16x32xf32>
    %155 = vector.broadcast %47 : vector<1x32xf32> to vector<16x32xf32>
    %156 = arith.addf %154, %155 : vector<16x32xf32>
    %cst_43 = arith.constant dense<0.000000e+00> : vector<16xf32>
    %157 = vector.multi_reduction <add>, %156, %cst_43 [1] : vector<16x32xf32> to vector<16xf32>
    %158 = vector.shape_cast %157 : vector<16xf32> to vector<16x1xf32>
    %cst_44 = arith.constant 3.200000e+01 : f32
    %159 = vector.broadcast %cst_44 : f32 to vector<16x1xf32>
    %160 = arith.divf %158, %159 : vector<16x1xf32>
    %161 = vector.broadcast %160 : vector<16x1xf32> to vector<16x32xf32>
    %162 = arith.subf %156, %161 : vector<16x32xf32>
    %163 = arith.mulf %162, %162 : vector<16x32xf32>
    %cst_45 = arith.constant dense<0.000000e+00> : vector<16xf32>
    %164 = vector.multi_reduction <add>, %163, %cst_45 [1] : vector<16x32xf32> to vector<16xf32>
    %165 = vector.shape_cast %164 : vector<16xf32> to vector<16x1xf32>
    %cst_46 = arith.constant 3.200000e+01 : f32
    %166 = vector.broadcast %cst_46 : f32 to vector<16x1xf32>
    %167 = arith.divf %165, %166 : vector<16x1xf32>
    %168 = vector.broadcast %160 : vector<16x1xf32> to vector<16x32xf32>
    %169 = arith.subf %156, %168 : vector<16x32xf32>
    %cst_47 = arith.constant 9.99999974E-6 : f32
    %170 = vector.broadcast %cst_47 : f32 to vector<16x1xf32>
    %171 = arith.addf %167, %170 : vector<16x1xf32>
    %172 = math.rsqrt %171 : vector<16x1xf32>
    %173 = vector.broadcast %172 : vector<16x1xf32> to vector<16x32xf32>
    %174 = arith.mulf %169, %173 : vector<16x32xf32>
    %175 = vector.broadcast %48 : vector<1x32xf32> to vector<16x32xf32>
    %176 = arith.mulf %174, %175 : vector<16x32xf32>
    %177 = vector.broadcast %49 : vector<1x32xf32> to vector<16x32xf32>
    %178 = arith.addf %176, %177 : vector<16x32xf32>
    %179 = arith.truncf %178 : vector<16x32xf32> to vector<16x32xbf16>
    %cst_48 = arith.constant dense<0.000000e+00> : vector<16x128xf32>
    %180 = tpu.matmul %179, %40, %cst_48 {dimension_numbers = #tpu.dot_dimension_numbers<[1], [0], [0], [1], [0, 0, 1, 1], [], []>} : vector<16x32xbf16>, vector<32x128xbf16>, vector<16x128xf32> -> vector<16x128xf32>
    %181 = vector.broadcast %44 : vector<1x128xf32> to vector<16x128xf32>
    %182 = arith.addf %180, %181 : vector<16x128xf32>
    %cst_49 = arith.constant 0.000000e+00 : f32
    %183 = vector.broadcast %cst_49 : f32 to vector<16x128xf32>
    %184 = arith.maximumf %182, %183 : vector<16x128xf32>
    %185 = arith.truncf %184 : vector<16x128xf32> to vector<16x128xbf16>
    %cst_50 = arith.constant dense<0.000000e+00> : vector<16x128xf32>
    %186 = tpu.matmul %185, %41, %cst_50 {dimension_numbers = #tpu.dot_dimension_numbers<[1], [0], [0], [1], [0, 0, 1, 1], [], []>} : vector<16x128xbf16>, vector<128x128xbf16>, vector<16x128xf32> -> vector<16x128xf32>
    %187 = vector.extract_strided_slice %186 {offsets = [0, 0], sizes = [16, 32], strides = [1, 1]} : vector<16x128xf32> to vector<16x32xf32>
    %188 = arith.addf %156, %187 : vector<16x32xf32>
    %189 = vector.broadcast %50 : vector<1x32xf32> to vector<16x32xf32>
    %190 = arith.addf %188, %189 : vector<16x32xf32>
    %c224 = arith.constant 224 : index
    %c0_51 = arith.constant 0 : index
    %191 = vector.load %arg1[%c224, %c0_51] : memref<448x128xbf16, #tpu.memory_space<vmem>>, vector<32x128xbf16>
    %c256 = arith.constant 256 : index
    %c0_52 = arith.constant 0 : index
    %192 = vector.load %arg1[%c256, %c0_52] : memref<448x128xbf16, #tpu.memory_space<vmem>>, vector<32x128xbf16>
    %c288 = arith.constant 288 : index
    %c0_53 = arith.constant 0 : index
    %193 = vector.load %arg1[%c288, %c0_53] : memref<448x128xbf16, #tpu.memory_space<vmem>>, vector<128x128xbf16>
    %c416 = arith.constant 416 : index
    %c0_54 = arith.constant 0 : index
    %194 = vector.load %arg1[%c416, %c0_54] : memref<448x128xbf16, #tpu.memory_space<vmem>>, vector<32x128xbf16>
    %c2_55 = arith.constant 2 : index
    %c0_56 = arith.constant 0 : index
    %195 = vector.load %arg2[%c2_55, %c0_56] : memref<4x128xf32, #tpu.memory_space<vmem>>, vector<1x128xf32>
    %c3_57 = arith.constant 3 : index
    %c0_58 = arith.constant 0 : index
    %196 = vector.load %arg2[%c3_57, %c0_58] : memref<4x128xf32, #tpu.memory_space<vmem>>, vector<1x128xf32>
    %c6 = arith.constant 6 : index
    %c0_59 = arith.constant 0 : index
    %197 = vector.load %arg3[%c6, %c0_59] : memref<12x32xf32, #tpu.memory_space<vmem>>, vector<1x32xf32>
    %c7 = arith.constant 7 : index
    %c0_60 = arith.constant 0 : index
    %198 = vector.load %arg3[%c7, %c0_60] : memref<12x32xf32, #tpu.memory_space<vmem>>, vector<1x32xf32>
    %c8 = arith.constant 8 : index
    %c0_61 = arith.constant 0 : index
    %199 = vector.load %arg3[%c8, %c0_61] : memref<12x32xf32, #tpu.memory_space<vmem>>, vector<1x32xf32>
    %c9 = arith.constant 9 : index
    %c0_62 = arith.constant 0 : index
    %200 = vector.load %arg3[%c9, %c0_62] : memref<12x32xf32, #tpu.memory_space<vmem>>, vector<1x32xf32>
    %c10 = arith.constant 10 : index
    %c0_63 = arith.constant 0 : index
    %201 = vector.load %arg3[%c10, %c0_63] : memref<12x32xf32, #tpu.memory_space<vmem>>, vector<1x32xf32>
    %c11 = arith.constant 11 : index
    %c0_64 = arith.constant 0 : index
    %202 = vector.load %arg3[%c11, %c0_64] : memref<12x32xf32, #tpu.memory_space<vmem>>, vector<1x32xf32>
    %cst_65 = arith.constant dense<0.000000e+00> : vector<16xf32>
    %203 = vector.multi_reduction <add>, %190, %cst_65 [1] : vector<16x32xf32> to vector<16xf32>
    %204 = vector.shape_cast %203 : vector<16xf32> to vector<16x1xf32>
    %cst_66 = arith.constant 3.200000e+01 : f32
    %205 = vector.broadcast %cst_66 : f32 to vector<16x1xf32>
    %206 = arith.divf %204, %205 : vector<16x1xf32>
    %207 = vector.broadcast %206 : vector<16x1xf32> to vector<16x32xf32>
    %208 = arith.subf %190, %207 : vector<16x32xf32>
    %209 = arith.mulf %208, %208 : vector<16x32xf32>
    %cst_67 = arith.constant dense<0.000000e+00> : vector<16xf32>
    %210 = vector.multi_reduction <add>, %209, %cst_67 [1] : vector<16x32xf32> to vector<16xf32>
    %211 = vector.shape_cast %210 : vector<16xf32> to vector<16x1xf32>
    %cst_68 = arith.constant 3.200000e+01 : f32
    %212 = vector.broadcast %cst_68 : f32 to vector<16x1xf32>
    %213 = arith.divf %211, %212 : vector<16x1xf32>
    %214 = vector.broadcast %206 : vector<16x1xf32> to vector<16x32xf32>
    %215 = arith.subf %190, %214 : vector<16x32xf32>
    %cst_69 = arith.constant 9.99999974E-6 : f32
    %216 = vector.broadcast %cst_69 : f32 to vector<16x1xf32>
    %217 = arith.addf %213, %216 : vector<16x1xf32>
    %218 = math.rsqrt %217 : vector<16x1xf32>
    %219 = vector.broadcast %218 : vector<16x1xf32> to vector<16x32xf32>
    %220 = arith.mulf %215, %219 : vector<16x32xf32>
    %221 = vector.broadcast %197 : vector<1x32xf32> to vector<16x32xf32>
    %222 = arith.mulf %220, %221 : vector<16x32xf32>
    %223 = vector.broadcast %198 : vector<1x32xf32> to vector<16x32xf32>
    %224 = arith.addf %222, %223 : vector<16x32xf32>
    %225 = arith.truncf %224 : vector<16x32xf32> to vector<16x32xbf16>
    %cst_70 = arith.constant dense<0.000000e+00> : vector<16x128xf32>
    %226 = tpu.matmul %225, %191, %cst_70 {dimension_numbers = #tpu.dot_dimension_numbers<[1], [0], [0], [1], [0, 0, 1, 1], [], []>} : vector<16x32xbf16>, vector<32x128xbf16>, vector<16x128xf32> -> vector<16x128xf32>
    %227 = vector.broadcast %195 : vector<1x128xf32> to vector<16x128xf32>
    %228 = arith.addf %226, %227 : vector<16x128xf32>
    %229 = vector.extract_strided_slice %228 {offsets = [0, 0], sizes = [16, 32], strides = [1, 1]} : vector<16x128xf32> to vector<16x32xf32>
    %230 = vector.extract_strided_slice %228 {offsets = [0, 32], sizes = [16, 32], strides = [1, 1]} : vector<16x128xf32> to vector<16x32xf32>
    %231 = vector.extract_strided_slice %228 {offsets = [0, 64], sizes = [16, 32], strides = [1, 1]} : vector<16x128xf32> to vector<16x32xf32>
    %232 = vector.broadcast %17 : vector<1x32xf32> to vector<16x32xf32>
    %233 = arith.mulf %229, %232 : vector<16x32xf32>
    %cst_71 = arith.constant dense<0.000000e+00> : vector<16x16xf32>
    %234 = tpu.matmul %233, %230, %cst_71 {dimension_numbers = #tpu.dot_dimension_numbers<[1], [1], [0], [0], [0, 0, 1, 0], [], []>} : vector<16x32xf32>, vector<16x32xf32>, vector<16x16xf32> -> vector<16x16xf32>
    %cst_72 = arith.constant dense<0xFF800000> : vector<16xf32>
    %235 = vector.multi_reduction <maximumf>, %234, %cst_72 [1] : vector<16x16xf32> to vector<16xf32>
    %236 = vector.shape_cast %235 : vector<16xf32> to vector<16x1xf32>
    %237 = vector.broadcast %236 : vector<16x1xf32> to vector<16x16xf32>
    %238 = arith.subf %234, %237 : vector<16x16xf32>
    %239 = math.exp %238 : vector<16x16xf32>
    %240 = arith.mulf %239, %9 : vector<16x16xf32>
    %cst_73 = arith.constant dense<0.000000e+00> : vector<16xf32>
    %241 = vector.multi_reduction <add>, %240, %cst_73 [1] : vector<16x16xf32> to vector<16xf32>
    %242 = vector.shape_cast %241 : vector<16xf32> to vector<16x1xf32>
    %243 = tpu.reciprocal %242 {approx = true} : vector<16x1xf32> -> vector<16x1xf32>
    %244 = vector.broadcast %243 : vector<16x1xf32> to vector<16x16xf32>
    %245 = arith.mulf %240, %244 : vector<16x16xf32>
    %246 = vector.broadcast %17 : vector<1x32xf32> to vector<16x32xf32>
    %247 = arith.mulf %231, %246 : vector<16x32xf32>
    %cst_74 = arith.constant dense<0.000000e+00> : vector<16x32xf32>
    %248 = tpu.matmul %245, %247, %cst_74 {dimension_numbers = #tpu.dot_dimension_numbers<[1], [0], [0], [1], [0, 0, 1, 1], [], []>} : vector<16x16xf32>, vector<16x32xf32>, vector<16x32xf32> -> vector<16x32xf32>
    %249 = vector.broadcast %24 : vector<1x32xf32> to vector<16x32xf32>
    %250 = arith.mulf %229, %249 : vector<16x32xf32>
    %cst_75 = arith.constant dense<0.000000e+00> : vector<16x16xf32>
    %251 = tpu.matmul %250, %230, %cst_75 {dimension_numbers = #tpu.dot_dimension_numbers<[1], [1], [0], [0], [0, 0, 1, 0], [], []>} : vector<16x32xf32>, vector<16x32xf32>, vector<16x16xf32> -> vector<16x16xf32>
    %cst_76 = arith.constant dense<0xFF800000> : vector<16xf32>
    %252 = vector.multi_reduction <maximumf>, %251, %cst_76 [1] : vector<16x16xf32> to vector<16xf32>
    %253 = vector.shape_cast %252 : vector<16xf32> to vector<16x1xf32>
    %254 = vector.broadcast %253 : vector<16x1xf32> to vector<16x16xf32>
    %255 = arith.subf %251, %254 : vector<16x16xf32>
    %256 = math.exp %255 : vector<16x16xf32>
    %257 = arith.mulf %256, %9 : vector<16x16xf32>
    %cst_77 = arith.constant dense<0.000000e+00> : vector<16xf32>
    %258 = vector.multi_reduction <add>, %257, %cst_77 [1] : vector<16x16xf32> to vector<16xf32>
    %259 = vector.shape_cast %258 : vector<16xf32> to vector<16x1xf32>
    %260 = tpu.reciprocal %259 {approx = true} : vector<16x1xf32> -> vector<16x1xf32>
    %261 = vector.broadcast %260 : vector<16x1xf32> to vector<16x16xf32>
    %262 = arith.mulf %257, %261 : vector<16x16xf32>
    %263 = vector.broadcast %24 : vector<1x32xf32> to vector<16x32xf32>
    %264 = arith.mulf %231, %263 : vector<16x32xf32>
    %cst_78 = arith.constant dense<0.000000e+00> : vector<16x32xf32>
    %265 = tpu.matmul %262, %264, %cst_78 {dimension_numbers = #tpu.dot_dimension_numbers<[1], [0], [0], [1], [0, 0, 1, 1], [], []>} : vector<16x16xf32>, vector<16x32xf32>, vector<16x32xf32> -> vector<16x32xf32>
    %266 = arith.addf %248, %265 : vector<16x32xf32>
    %267 = vector.broadcast %31 : vector<1x32xf32> to vector<16x32xf32>
    %268 = arith.mulf %229, %267 : vector<16x32xf32>
    %cst_79 = arith.constant dense<0.000000e+00> : vector<16x16xf32>
    %269 = tpu.matmul %268, %230, %cst_79 {dimension_numbers = #tpu.dot_dimension_numbers<[1], [1], [0], [0], [0, 0, 1, 0], [], []>} : vector<16x32xf32>, vector<16x32xf32>, vector<16x16xf32> -> vector<16x16xf32>
    %cst_80 = arith.constant dense<0xFF800000> : vector<16xf32>
    %270 = vector.multi_reduction <maximumf>, %269, %cst_80 [1] : vector<16x16xf32> to vector<16xf32>
    %271 = vector.shape_cast %270 : vector<16xf32> to vector<16x1xf32>
    %272 = vector.broadcast %271 : vector<16x1xf32> to vector<16x16xf32>
    %273 = arith.subf %269, %272 : vector<16x16xf32>
    %274 = math.exp %273 : vector<16x16xf32>
    %275 = arith.mulf %274, %9 : vector<16x16xf32>
    %cst_81 = arith.constant dense<0.000000e+00> : vector<16xf32>
    %276 = vector.multi_reduction <add>, %275, %cst_81 [1] : vector<16x16xf32> to vector<16xf32>
    %277 = vector.shape_cast %276 : vector<16xf32> to vector<16x1xf32>
    %278 = tpu.reciprocal %277 {approx = true} : vector<16x1xf32> -> vector<16x1xf32>
    %279 = vector.broadcast %278 : vector<16x1xf32> to vector<16x16xf32>
    %280 = arith.mulf %275, %279 : vector<16x16xf32>
    %281 = vector.broadcast %31 : vector<1x32xf32> to vector<16x32xf32>
    %282 = arith.mulf %231, %281 : vector<16x32xf32>
    %cst_82 = arith.constant dense<0.000000e+00> : vector<16x32xf32>
    %283 = tpu.matmul %280, %282, %cst_82 {dimension_numbers = #tpu.dot_dimension_numbers<[1], [0], [0], [1], [0, 0, 1, 1], [], []>} : vector<16x16xf32>, vector<16x32xf32>, vector<16x32xf32> -> vector<16x32xf32>
    %284 = arith.addf %266, %283 : vector<16x32xf32>
    %285 = vector.broadcast %38 : vector<1x32xf32> to vector<16x32xf32>
    %286 = arith.mulf %229, %285 : vector<16x32xf32>
    %cst_83 = arith.constant dense<0.000000e+00> : vector<16x16xf32>
    %287 = tpu.matmul %286, %230, %cst_83 {dimension_numbers = #tpu.dot_dimension_numbers<[1], [1], [0], [0], [0, 0, 1, 0], [], []>} : vector<16x32xf32>, vector<16x32xf32>, vector<16x16xf32> -> vector<16x16xf32>
    %cst_84 = arith.constant dense<0xFF800000> : vector<16xf32>
    %288 = vector.multi_reduction <maximumf>, %287, %cst_84 [1] : vector<16x16xf32> to vector<16xf32>
    %289 = vector.shape_cast %288 : vector<16xf32> to vector<16x1xf32>
    %290 = vector.broadcast %289 : vector<16x1xf32> to vector<16x16xf32>
    %291 = arith.subf %287, %290 : vector<16x16xf32>
    %292 = math.exp %291 : vector<16x16xf32>
    %293 = arith.mulf %292, %9 : vector<16x16xf32>
    %cst_85 = arith.constant dense<0.000000e+00> : vector<16xf32>
    %294 = vector.multi_reduction <add>, %293, %cst_85 [1] : vector<16x16xf32> to vector<16xf32>
    %295 = vector.shape_cast %294 : vector<16xf32> to vector<16x1xf32>
    %296 = tpu.reciprocal %295 {approx = true} : vector<16x1xf32> -> vector<16x1xf32>
    %297 = vector.broadcast %296 : vector<16x1xf32> to vector<16x16xf32>
    %298 = arith.mulf %293, %297 : vector<16x16xf32>
    %299 = vector.broadcast %38 : vector<1x32xf32> to vector<16x32xf32>
    %300 = arith.mulf %231, %299 : vector<16x32xf32>
    %cst_86 = arith.constant dense<0.000000e+00> : vector<16x32xf32>
    %301 = tpu.matmul %298, %300, %cst_86 {dimension_numbers = #tpu.dot_dimension_numbers<[1], [0], [0], [1], [0, 0, 1, 1], [], []>} : vector<16x16xf32>, vector<16x32xf32>, vector<16x32xf32> -> vector<16x32xf32>
    %302 = arith.addf %284, %301 : vector<16x32xf32>
    %303 = arith.truncf %302 : vector<16x32xf32> to vector<16x32xbf16>
    %cst_87 = arith.constant dense<0.000000e+00> : vector<16x128xf32>
    %304 = tpu.matmul %303, %194, %cst_87 {dimension_numbers = #tpu.dot_dimension_numbers<[1], [0], [0], [1], [0, 0, 1, 1], [], []>} : vector<16x32xbf16>, vector<32x128xbf16>, vector<16x128xf32> -> vector<16x128xf32>
    %305 = vector.extract_strided_slice %304 {offsets = [0, 0], sizes = [16, 32], strides = [1, 1]} : vector<16x128xf32> to vector<16x32xf32>
    %306 = arith.addf %190, %305 : vector<16x32xf32>
    %307 = vector.broadcast %199 : vector<1x32xf32> to vector<16x32xf32>
    %308 = arith.addf %306, %307 : vector<16x32xf32>
    %cst_88 = arith.constant dense<0.000000e+00> : vector<16xf32>
    %309 = vector.multi_reduction <add>, %308, %cst_88 [1] : vector<16x32xf32> to vector<16xf32>
    %310 = vector.shape_cast %309 : vector<16xf32> to vector<16x1xf32>
    %cst_89 = arith.constant 3.200000e+01 : f32
    %311 = vector.broadcast %cst_89 : f32 to vector<16x1xf32>
    %312 = arith.divf %310, %311 : vector<16x1xf32>
    %313 = vector.broadcast %312 : vector<16x1xf32> to vector<16x32xf32>
    %314 = arith.subf %308, %313 : vector<16x32xf32>
    %315 = arith.mulf %314, %314 : vector<16x32xf32>
    %cst_90 = arith.constant dense<0.000000e+00> : vector<16xf32>
    %316 = vector.multi_reduction <add>, %315, %cst_90 [1] : vector<16x32xf32> to vector<16xf32>
    %317 = vector.shape_cast %316 : vector<16xf32> to vector<16x1xf32>
    %cst_91 = arith.constant 3.200000e+01 : f32
    %318 = vector.broadcast %cst_91 : f32 to vector<16x1xf32>
    %319 = arith.divf %317, %318 : vector<16x1xf32>
    %320 = vector.broadcast %312 : vector<16x1xf32> to vector<16x32xf32>
    %321 = arith.subf %308, %320 : vector<16x32xf32>
    %cst_92 = arith.constant 9.99999974E-6 : f32
    %322 = vector.broadcast %cst_92 : f32 to vector<16x1xf32>
    %323 = arith.addf %319, %322 : vector<16x1xf32>
    %324 = math.rsqrt %323 : vector<16x1xf32>
    %325 = vector.broadcast %324 : vector<16x1xf32> to vector<16x32xf32>
    %326 = arith.mulf %321, %325 : vector<16x32xf32>
    %327 = vector.broadcast %200 : vector<1x32xf32> to vector<16x32xf32>
    %328 = arith.mulf %326, %327 : vector<16x32xf32>
    %329 = vector.broadcast %201 : vector<1x32xf32> to vector<16x32xf32>
    %330 = arith.addf %328, %329 : vector<16x32xf32>
    %331 = arith.truncf %330 : vector<16x32xf32> to vector<16x32xbf16>
    %cst_93 = arith.constant dense<0.000000e+00> : vector<16x128xf32>
    %332 = tpu.matmul %331, %192, %cst_93 {dimension_numbers = #tpu.dot_dimension_numbers<[1], [0], [0], [1], [0, 0, 1, 1], [], []>} : vector<16x32xbf16>, vector<32x128xbf16>, vector<16x128xf32> -> vector<16x128xf32>
    %333 = vector.broadcast %196 : vector<1x128xf32> to vector<16x128xf32>
    %334 = arith.addf %332, %333 : vector<16x128xf32>
    %cst_94 = arith.constant 0.000000e+00 : f32
    %335 = vector.broadcast %cst_94 : f32 to vector<16x128xf32>
    %336 = arith.maximumf %334, %335 : vector<16x128xf32>
    %337 = arith.truncf %336 : vector<16x128xf32> to vector<16x128xbf16>
    %cst_95 = arith.constant dense<0.000000e+00> : vector<16x128xf32>
    %338 = tpu.matmul %337, %193, %cst_95 {dimension_numbers = #tpu.dot_dimension_numbers<[1], [0], [0], [1], [0, 0, 1, 1], [], []>} : vector<16x128xbf16>, vector<128x128xbf16>, vector<16x128xf32> -> vector<16x128xf32>
    %339 = vector.extract_strided_slice %338 {offsets = [0, 0], sizes = [16, 32], strides = [1, 1]} : vector<16x128xf32> to vector<16x32xf32>
    %340 = arith.addf %308, %339 : vector<16x32xf32>
    %341 = vector.broadcast %202 : vector<1x32xf32> to vector<16x32xf32>
    %342 = arith.addf %340, %341 : vector<16x32xf32>
    %c0_96 = arith.constant 0 : index
    %c0_97 = arith.constant 0 : index
    %343 = vector.load %arg4[%c0_96, %c0_97] : memref<16x32xf32, #tpu.memory_space<vmem>>, vector<16x32xf32>
    tpu.vector_store %arg4[%c0_96, %c0_97], %342 {strides = array<i32>} : memref<16x32xf32, #tpu.memory_space<vmem>>, vector<16x32xf32>,
    return
  }
}

</mosaic_0001>

<bundles_post_ra>
// kernel: tpu_custom_call.1
= control target key start
LH: loop header
LB: loop body
LE: loop exit
PB: predicated region body
PF: predicated region fallthrough
CT: control target
= control target key end

     0   :  { %9 = vsyncpa [#allocation3], 0  ;;  %s3798_s0 = inlined_call_operand.hbm [shape: f32[16,32], index: 0, kind: input, shape index: {}]   ;;  %s3799_s1 = inlined_call_operand.hbm [shape: bf16[448,128], index: 1, kind: input, shape index: {}]   ;;  %s3800_s2 = inlined_call_operand.vmem [shape: f32[4,128], index: 2, kind: input, shape index: {}]   ;;  %s3801_s3 = inlined_call_operand.hbm [shape: f32[12,32], index: 3, kind: input, shape index: {}]   ;;  %s3802_s4 = inlined_call_operand.hbm [shape: f32[16,32], index: 4, kind: output, shape index: {}]  }
   0x1   :  { %10 = vsyncpa [#allocation6], 0 }
   0x2   :  { %11 = vsyncpa [#allocation4], 0  ;;  %s3304_s15 = smov [#allocation5]   ;;  %s3210_s19 = scalar_lea.hbm %s3799_s1, 3584 }
   0x3   :  { %s29_s16 = sshll.u32 %s3304_s15, 4  ;;  %p3211_p0 = scmp.ne.s32.totalorder %s3799_s1, %s3210_s19  ;;  %s30_s16 = int_to_ptr.vmem [resolvable:$true] %s29_s16 }
   0x4   :  { %p3214_p1 = scmp.lt.u32.totalorder %s3210_s19, %s3799_s1 }
   0x6   :  { %p3216_p2 = pnand %p3214_p1, %p3211_p0 }
   0x8   :  { %3219 = shalt.err (!%p3216_p2)
}
   0x9   :  { %s3220_s24 = scalar_lea.vmem %s30_s16, 3584  ;;  %p3225_p4 = scmp.lt.s32.totalorder %s30_s16, %s30_s16 }
   0xa   :  { %p3221_p3 = scmp.ne.s32.totalorder %s30_s16, %s3220_s24  ;;  %p3226_p5 = scmp.lt.s32.totalorder %s3220_s24, %s3220_s24 }
   0xc   :  { %p3227_p6 = por %p3226_p5, %p3225_p4 }
   0xe   :  { %p3228_p7 = pnand %p3227_p6, %p3221_p3 }
  0x10   :  { %3231 = shalt.err (!%p3228_p7)
}
  0x11   :  { %s3305_s25 = smov 64   ;;  %s3306_s26 = smov 4  }
  0x12   :  { %35 = dma.hbm_to_vmem [thread:$0]  %s3799_s1, 3584, %s30_s16, [#allocation6], %s3305_s25, %s3305_s25, %s3306_s26  }
  0x13   :  { %s3307_s29 = smov [#allocation2]   ;;  %s3232_s7 = scalar_lea.hbm %s3798_s0, 256 }
  0x14   :  { %s17_s30 = sshll.u32 %s3307_s29, 4  ;;  %p3233_p8 = scmp.ne.s32.totalorder %s3798_s0, %s3232_s7  ;;  %s18_s30 = int_to_ptr.vmem [resolvable:$true] %s17_s30 }
  0x15   :  { %p3236_p9 = scmp.lt.u32.totalorder %s3232_s7, %s3798_s0 }
  0x17   :  { %p3238_p10 = pnand %p3236_p9, %p3233_p8 }
  0x19   :  { %3241 = shalt.err (!%p3238_p10)
}
  0x1a   :  { %s3242_s12 = scalar_lea.vmem %s18_s30, 256  ;;  %p3247_p12 = scmp.lt.s32.totalorder %s18_s30, %s18_s30 }
  0x1b   :  { %p3243_p11 = scmp.ne.s32.totalorder %s18_s30, %s3242_s12  ;;  %p3248_p13 = scmp.lt.s32.totalorder %s3242_s12, %s3242_s12 }
  0x1d   :  { %p3249_p0 = por %p3248_p13, %p3247_p12 }
  0x1f   :  { %p3250_p1 = pnand %p3249_p0, %p3243_p11 }
  0x21   :  { %3253 = shalt.err (!%p3250_p1)
}
  0x22   :  { %s3308_s1 = smov 128   ;;  %s3309_s13 = smov 8  }
  0x23   :  { %23 = dma.hbm_to_vmem [thread:$0]  %s3798_s0, 256, %s18_s30, [#allocation3], %s3308_s1, %s3308_s1, %s3309_s13  }
  0x24   :  { %s3310_s16 = smov [#allocation7]   ;;  %s3254_s20 = scalar_lea.hbm %s3801_s3, 256 }
  0x25   :  { %s43_s17 = sshll.u32 %s3310_s16, 4  ;;  %p3255_p2 = scmp.ne.s32.totalorder %s3801_s3, %s3254_s20  ;;  %s44_s17 = int_to_ptr.vmem [resolvable:$true] %s43_s17 }
  0x26   :  { %p3258_p3 = scmp.lt.u32.totalorder %s3254_s20, %s3801_s3 }
  0x28   :  { %p3260_p4 = pnand %p3258_p3, %p3255_p2 }
  0x2a   :  { %3263 = shalt.err (!%p3260_p4)
}
  0x2b   :  { %s3264_s26 = scalar_lea.vmem %s44_s17, 256  ;;  %p3269_p6 = scmp.lt.s32.totalorder %s44_s17, %s44_s17 }
  0x2c   :  { %p3265_p5 = scmp.ne.s32.totalorder %s44_s17, %s3264_s26  ;;  %p3270_p7 = scmp.lt.s32.totalorder %s3264_s26, %s3264_s26 }
  0x2e   :  { %p3271_p8 = por %p3270_p7, %p3269_p6 }
  0x30   :  { %p3272_p9 = pnand %p3271_p8, %p3265_p5 }
  0x32   :  { %3275 = shalt.err (!%p3272_p9)
}
  0x33   :  { %49 = dma.hbm_to_vmem [thread:$0]  %s3801_s3, 256, %s44_s17, [#allocation6], %s3308_s1, %s3308_s1, %s3309_s13  }
  0x34   :  { %3298 = dma.done.wait [#allocation3], 256  }
  0x35   :  { %3299 = vsyncadd [#allocation3], 4294967040 }
  0x36   :  { %3300 = dma.done.wait [#allocation6], 3840  }
  0x37   :  { %3301 = vsyncadd [#allocation6], 4294963456  ;;  %vm132_vm0 = vcmask 261120   ;;  %v3384_v0 = vld [vmem:[#allocation2] sm:$0xff]  ;;  %v3386_v1 = vld [vmem:[#allocation2 + $0x8] sm:$0xff]  ;;  %v3311_v15 = vmov 0.0   ;;  %v62_v34 = vlaneseq }
  0x38   :  { %v133_v2 = vsel %vm132_vm0, %v3384_v0, 0.0  ;;  %v136_v3 = vsel %vm132_vm0, %v3386_v1, 0.0  ;;  %v3102_v14 = vld [vmem:[#allocation5] sm:$0xff]   ;;  %2749 = vmatprep.subr.bf16.mxu1 %v3311_v15  ;;  %v3103_v16 = vld [vmem:[#allocation5 + $0x8] sm:$0xff]   ;;  %vm3312_vm1 = vmmov 0   ;;  %s3313_s29 = smov 96   ;;  %vm3440_vm9 = vmpackc.low %vm132_vm0, %vm132_vm0 }
  0x39   :  { %134 = vadd.xlane.f32.xlu0 %v133_v2  ;;  %2750 = vmatpush3.bf16.msra.mxu1 %v3102_v14  ;;  %v2551_v25 = vld [vmem:[#allocation7] ss:$0 sm:$0xff]  ;;  %v2552_v29 = vld [vmem:[#allocation7 + $0x1] ss:$0 sm:$0xff]  ;;  %v3402_v35 = vand.u32 127, %v62_v34  ;;  %vm326_vm10 = vcmask 130048  }
  0x3a   :  { %2753 = vmatprep.mubr.msk.bf16.mxu1 %vm3312_vm1, %v3311_v15  ;;  %2751 = vmatprep.subr.bf16.mxu1 %v3311_v15  ;;  %v2553_v36 = vld [vmem:[%s3800_s2] ss:$0 sm:$0xff]  ;;  %s3314_s9 = smov [#allocation8]  }
  0x3b   :  { %vm86_vm2 = vcmp.ge.s32.totalorder %v3402_v35, 16  ;;  %vm87_vm3 = vcmp.lt.s32.totalorder %v3402_v35, 24  ;;  %vm77_vm4 = vcmp.lt.s32.totalorder %v3402_v35, 8  ;;  %vm81_vm6 = vcmp.ge.s32.totalorder %v3402_v35, 8  ;;  %s2532_s10 = sshll.u32 %s3314_s9, 4  ;;  %s2533_s10 = int_to_ptr.vmem [resolvable:$true] %s2532_s10 }
  0x3c   :  { %vm88_vm5 = vmand %vm86_vm2, %vm87_vm3  ;;  %v3411_v38 = vsel %vm77_vm4, 1.0, %v3311_v15  ;;  %vm82_vm7 = vcmp.lt.s32.totalorder %v3402_v35, 16  ;;  %vm91_vm13 = vcmp.ge.s32.totalorder %v3402_v35, 24  ;;  %vm92_vm14 = vcmp.lt.s32.totalorder %v3402_v35, 32  ;;  %p3281_p11 = scmp.lt.s32.totalorder %s2533_s10, %s2533_s10 }
  0x3d   :  { %137 = vadd.xlane.f32.xlu0 %v136_v3  ;;  %2752 = vmatpush3.bf16.msra.mxu1 %v3103_v16  ;;  %v3414_v39 = vsel %vm88_vm5, 1.0, %v3311_v15  ;;  %vm83_vm8 = vmand %vm81_vm6, %vm82_vm7 }
  0x3e   :  { %v3432_v48 = vsel %vm83_vm8, 1.0, %v3311_v15  ;;  %vm93_vm15 = vmand %vm91_vm13, %vm92_vm14 }
  0xc6   :  { %v135_v4 = vpop.xlane.xlu0 %134 }
  0xc7   :  { %v140_v5 = vmul.f32 0.03125, %v135_v4 }
  0xc9   :  { %v142_v6 = vsub.f32 %v3384_v0, %v140_v5 }
  0xca   :  { %v138_v7 = vpop.xlane.xlu0 %137 }
  0xcb   :  { %v141_v8 = vmul.f32 0.03125, %v138_v7  ;;  %v144_v9 = vmul.f32 %v142_v6, %v142_v6 }
  0xcd   :  { %v143_v10 = vsub.f32 %v3386_v1, %v141_v8  ;;  %v146_v11 = vsel %vm132_vm0, %v144_v9, 0.0 }
  0xce   :  { %147 = vadd.xlane.f32.xlu1 %v146_v11 }
  0xcf   :  { %v145_v12 = vmul.f32 %v143_v10, %v143_v10 }
  0xd1   :  { %v149_v13 = vsel %vm132_vm0, %v145_v12, 0.0 }
  0xd2   :  { %150 = vadd.xlane.f32.xlu1 %v149_v13 }
 0x15b   :  { %v148_v17 = vpop.xlane.xlu1 %147 }
 0x15c   :  { %v152_v18 = vmul.f32 0.03125, %v148_v17 }
 0x15e   :  { %v154_v19 = vadd.f32 1e-05, %v152_v18  ;;  %v69_v18 = vshra.s32 %v3402_v35, 3 }
 0x15f   :  { %v151_v20 = vpop.xlane.xlu1 %150 }
 0x160   :  { %3130 = vrsqrt.f32 %v154_v19  ;;  %v153_v21 = vmul.f32 0.03125, %v151_v20 }
 0x162   :  { %v155_v22 = vadd.f32 1e-05, %v153_v21 }
 0x164   :  { %3132 = vrsqrt.f32 %v155_v22 }
 0x16a   :  { %v3131_v23 = vpop.eup %3130 }
 0x16b   :  { %v158_v24 = vmul.f32 %v3131_v23, %v142_v6 }
 0x16d   :  { %v164_v28 = vmul.f32 %v2551_v25, %v158_v24 }
 0x16e   :  { %v3133_v26 = vpop.eup %3132 }
 0x16f   :  { %v159_v27 = vmul.f32 %v3133_v26, %v143_v10  ;;  %v170_v31 = vadd.f32 %v2552_v29, %v164_v28  ;;  %v63_v10 = vshrl.u32 %v62_v34, 7 }
 0x171   :  { %v165_v30 = vmul.f32 %v2551_v25, %v159_v27  ;;  %v64_v12 = vadd.s32 8, %v63_v10 }
 0x173   :  { %v171_v32 = vadd.f32 %v2552_v29, %v165_v30  ;;  %v68_v16 = vshra.s32 %v64_v12, 3 }
 0x175   :  { %v172_v33 = vpack.c.bf16 %v171_v32, %v170_v31  ;;  %vm71_vm11 = vcmp.eq.s32.totalorder %v68_v16, %v69_v18 }
 0x176   :  { %v3490_v23 = vsel %vm71_vm11, 1.0, %v3311_v15 }
 0x177   :  { %2754 = vmatmul.mubr.msk.bf16.vlgmr.msra.gmra.mrb[0].mxu1 %vm132_vm0, %v172_v33 }
 0x24a   :  { %v226_v37 = vpop.f32.mrb[0].mxu1 }
 0x24b   :  { %v3416_v40 = vadd.f32 %v2553_v36, %v226_v37  ;;  %v2755_v41 = vpop.f32.mrb[1].mxu1 }
 0x24c   :  { %v229_v42 = vpop.f32.mrb[2].mxu1 }
 0x24d   :  { %v3418_v43 = vadd.f32 %v2553_v36, %v229_v42  ;;  %v2756_v44 = vpop.f32.mrb[3].mxu1  ;;  %v233_v45 = vmul.f32 %v3411_v38, %v3416_v40  ;;  %v648_v46 = vmul.f32 %v3414_v39, %v3416_v40  ;;  %v357_v56 = vmul.f32 %v3432_v48, %v3416_v40 }
 0x24e   :  { %v67_v44 = vshra.s32 %v63_v10, 3 }
 0x24f   :  { %2761 = vmatprep.mubr.msk.f32.mxu1 %vm132_vm0, %v233_v45  ;;  %2789 = vmatprep.mubr.msk.f32.mxu0 %vm132_vm0, %v648_v46  ;;  %v3052_v47 = vpack.i.bf16 %v3418_v43, %v3416_v40  ;;  %v234_v54 = vmul.f32 %v3411_v38, %v3418_v43  ;;  %v649_v55 = vmul.f32 %v3414_v39, %v3418_v43 }
 0x250   :  { %v358_v57 = vmul.f32 %v3432_v48, %v3418_v43  ;;  %vm70_vm12 = vcmp.eq.s32.totalorder %v67_v44, %v69_v18 }
 0x251   :  { %3053 = vrot.lane.b32.xlu0 %v3052_v47, %s3313_s29 }
 0x255   :  { %465 = vrot.lane.b32.xlu0 %v3432_v48, %s3305_s25 }
 0x259   :  { %756 = vrot.lane.b32.xlu0 %v3414_v39, %s3305_s25 }
 0x2c3   :  { %v3054_v49 = vpop.permute.xlu0 %3053 }
 0x2c4   :  { %v3056_v50 = vunpack.i.h.bf16 %v3054_v49  ;;  %v3055_v51 = vunpack.i.l.bf16 %v3054_v49 }
 0x2c6   :  { %v3444_v53 = vpack.c.bf16 %v3056_v50, %v3055_v51 }
 0x2c7   :  { %v3497_v36 = vpop.permute.xlu0 %465 }
 0x2c8   :  { %2951 = vmatprep.subr.msk.bf16.mxu1 %vm3440_vm9, %v3444_v53  ;;  %2971 = vmatprep.subr.msk.bf16.mxu0 %vm3440_vm9, %v3444_v53 }
 0x2c9   :  { %2954 = vmatpush3.bf16.xpose.msk.msra.mxu1 %vm3440_vm9, %v3444_v53  ;;  %2974 = vmatpush3.bf16.xpose.msk.msra.mxu0 %vm3440_vm9, %v3444_v53 }
 0x2ca   :  { %2957 = vmatprep.subr.msk.bf16.mxu1 %vm3440_vm9, %v3444_v53  ;;  %2813 = vmatprep.subr.bf16.mxu0 %v3311_v15 }
 0x2cb   :  { %v3506_v47 = vpop.permute.xlu0 %756 }
 0x2d0   :  { %2762 = vmatmul.mubr.msk.f32.vlgmr.msra.gmra.mrb[4].mxu1 %vm132_vm0, %v234_v54  ;;  %2790 = vmatmul.mubr.msk.f32.vlgmr.msra.gmra.mrb[0].mxu0 %vm132_vm0, %v649_v55  ;;  %v3516_v55 = vsel %vm70_vm12, 1.0, %v3311_v15 }
 0x2d1   :  { %2960 = vmatpush3.bf16.xpose.msk.msra.mxu1 %vm3440_vm9, %v3444_v53  ;;  %2768 = vmatprep.mubr.msk.f32.mxu1 %vm132_vm0, %v357_v56  ;;  %v759_v56 = vmul.f32 %v3506_v47, %v3416_v40 }
 0x2d2   :  { %2817 = vmatprep.mubr.msk.bf16.mxu0 %vm3312_vm1, %v3311_v15 }
 0x2d8   :  { %2769 = vmatmul.mubr.msk.f32.vlgmr.msra.gmra.mrb[6].mxu1 %vm132_vm0, %v358_v57 }
 0x3a3   :  { %v2763_v58 = vpop.f32.mrb[4].mxu1  ;;  %v2791_v59 = vpop.f32.mrb[0].mxu0 }
 0x3a4   :  { %v317_v60 = vpop.f32.mrb[5].mxu1  ;;  %v722_v61 = vpop.f32.mrb[1].mxu0  ;;  %v330_v5 = vsel %vm326_vm10, %v2763_v58, -inf  ;;  %v734_v7 = vsel %vm326_vm10, %v2791_v59, -inf }
 0x3a5   :  { %v327_v4 = vsel %vm326_vm10, %v317_v60, -inf  ;;  %v731_v6 = vsel %vm326_vm10, %v722_v61, -inf }
 0x3ab   :  { %v2770_v62 = vpop.f32.mrb[6].mxu1 }
 0x3ac   :  { %v431_v63 = vpop.f32.mrb[7].mxu1  ;;  %v443_v3 = vsel %vm326_vm10, %v2770_v62, -inf }
 0x3ad   :  { %v440_v2 = vsel %vm326_vm10, %v431_v63, -inf }
 0x3ae   :  { %441 = vmax.xlane.f32.xlu1 %v440_v2 }
 0x3b2   :  { %444 = vmax.xlane.f32.xlu1 %v443_v3 }
 0x3b6   :  { %328 = vmax.xlane.f32.xlu1 %v327_v4 }
 0x3ba   :  { %331 = vmax.xlane.f32.xlu1 %v330_v5 }
 0x3be   :  { %732 = vmax.xlane.f32.xlu1 %v731_v6 }
 0x3c2   :  { %735 = vmax.xlane.f32.xlu1 %v734_v7  ;;  %v468_v7 = vmul.f32 %v3497_v36, %v3416_v40 }
 0x3d3   :  { %352 = vrot.lane.b32.xlu1 %v3411_v38, %s3305_s25 }
 0x43b   :  { %v442_v8 = vpop.xlane.xlu1 %441 }
 0x43c   :  { %v446_v32 = vsub.f32 %v431_v63, %v442_v8  ;;  %v469_v8 = vmul.f32 %v3497_v36, %v3418_v43 }
 0x43e   :  { %v448_v41 = vmul.f32 1.442695, %v446_v32 }
 0x43f   :  { %v445_v9 = vpop.xlane.xlu1 %444 }
 0x440   :  { %v447_v11 = vsub.f32 %v2770_v62, %v445_v9  ;;  %v3057_v9 = vpack.i.bf16 %v469_v8, %v468_v7 }
 0x442   :  { %v450_v13 = vmul.f32 1.442695, %v447_v11 }
 0x443   :  { %v329_v14 = vpop.xlane.xlu1 %328 }
 0x444   :  { %3134 = vpow2.f32 %v450_v13  ;;  %v333_v21 = vsub.f32 %v317_v60, %v329_v14  ;;  %v760_v60 = vmul.f32 %v3506_v47, %v3418_v43 }
 0x446   :  { %v335_v25 = vmul.f32 1.442695, %v333_v21  ;;  %v3067_v63 = vpack.i.bf16 %v760_v60, %v759_v56 }
 0x447   :  { %v332_v17 = vpop.xlane.xlu1 %331 }
 0x448   :  { %v334_v19 = vsub.f32 %v2763_v58, %v332_v17 }
 0x44a   :  { %v337_v20 = vmul.f32 1.442695, %v334_v19 }
 0x44b   :  { %v733_v22 = vpop.xlane.xlu1 %732 }
 0x44c   :  { %3136 = vpow2.f32 %v337_v20  ;;  %v737_v28 = vsub.f32 %v722_v61, %v733_v22 }
 0x44d   :  { %3138 = vpow2.f32 %v335_v25 }
 0x44e   :  { %v3135_v24 = vpop.eup %3134  ;;  %v739_v33 = vmul.f32 1.442695, %v737_v28 }
 0x44f   :  { %v736_v26 = vpop.xlane.xlu1 %735  ;;  %v3493_v27 = vmul.f32 %v3135_v24, %v3490_v23 }
 0x450   :  { %v738_v29 = vsub.f32 %v2791_v59, %v736_v26 }
 0x451   :  { %v457_v30 = vsel %vm326_vm10, %v3493_v27, 0.0 }
 0x452   :  { %v741_v31 = vmul.f32 1.442695, %v738_v29  ;;  %458 = vadd.xlane.f32.xlu1 %v457_v30 }
 0x453   :  { %v3504_v45 = vpop.permute.xlu1 %352 }
 0x454   :  { %3140 = vpow2.f32 %v741_v31  ;;  %v355_v49 = vmul.f32 %v3504_v45, %v3416_v40  ;;  %v356_v50 = vmul.f32 %v3504_v45, %v3418_v43 }
 0x455   :  { %3142 = vpow2.f32 %v739_v33 }
 0x456   :  { %v3137_v34 = vpop.eup %3136  ;;  %3144 = vpow2.f32 %v448_v41  ;;  %v3062_v58 = vpack.i.bf16 %v356_v50, %v355_v49 }
 0x457   :  { %v3500_v37 = vmul.f32 %v3137_v34, %v3490_v23  ;;  %v3139_v46 = vpop.eup %3138 }
 0x458   :  { %v339_v59 = vmul.f32 %v3139_v46, %v3516_v55 }
 0x459   :  { %v344_v42 = vsel %vm326_vm10, %v3500_v37, 0.0 }
 0x45a   :  { %345 = vadd.xlane.f32.xlu0 %v344_v42  ;;  %v341_v62 = vsel %vm326_vm10, %v339_v59, 0.0 }
 0x45e   :  { %v3141_v51 = vpop.eup %3140 }
 0x45f   :  { %v3513_v54 = vmul.f32 %v3141_v51, %v3490_v23  ;;  %v3143_v61 = vpop.eup %3142  ;;  %v3550_v51 = vsel %vm93_vm15, 1.0, %v3311_v15 }
 0x460   :  { %v743_v2 = vmul.f32 %v3143_v61, %v3516_v55  ;;  %v3145_v3 = vpop.eup %3144  ;;  %v852_v35 = vmul.f32 %v3550_v51, %v3416_v40  ;;  %v853_v56 = vmul.f32 %v3550_v51, %v3418_v43 }
 0x461   :  { %v748_v57 = vsel %vm326_vm10, %v3513_v54, 0.0  ;;  %v452_v5 = vmul.f32 %v3145_v3, %v3516_v55 }
 0x462   :  { %749 = vadd.xlane.f32.xlu0 %v748_v57  ;;  %v745_v4 = vsel %vm326_vm10, %v743_v2, 0.0 }
 0x463   :  { %3063 = vrot.lane.b32.xlu1 %v3062_v58, %s3305_s25  ;;  %v454_v6 = vsel %vm326_vm10, %v452_v5, 0.0 }
 0x466   :  { %342 = vadd.xlane.f32.xlu0 %v341_v62 }
 0x467   :  { %3068 = vrot.lane.b32.xlu1 %v3067_v63, %s3305_s25 }
 0x46a   :  { %746 = vadd.xlane.f32.xlu0 %v745_v4 }
 0x46e   :  { %455 = vadd.xlane.f32.xlu0 %v454_v6 }
 0x484   :  { %3058 = vrot.lane.b32.xlu0 %v3057_v9, %s3305_s25 }
 0x4df   :  { %v459_v13 = vpop.xlane.xlu1 %458 }
 0x4e0   :  { %3146 = vrcp.f32 %v459_v13  ;;  %v3104_v13 = vld [vmem:[#allocation5 + $0x60] sm:$0xff]  }
 0x4e1   :  { %2814 = vmatpush3.bf16.msra.mxu0 %v3104_v13  ;;  %v2585_v13 = vld [vmem:[#allocation7 + $0x3] ss:$0 sm:$0xff] }
 0x4e2   :  { %2815 = vmatprep.subr.bf16.mxu0 %v3311_v15 }
 0x4e3   :  { %v3064_v17 = vpop.permute.xlu1 %3063 }
 0x4e4   :  { %v3066_v19 = vunpack.i.h.bf16 %v3064_v17  ;;  %v3065_v20 = vunpack.i.l.bf16 %v3064_v17 }
 0x4e6   :  { %v2965_v28 = vpack.c.bf16 %v3066_v19, %v3065_v20 }
 0x4e7   :  { %v346_v10 = vpop.xlane.xlu0 %345  ;;  %v3069_v25 = vpop.permute.xlu1 %3068 }
 0x4e8   :  { %v3071_v31 = vunpack.i.h.bf16 %v3069_v25  ;;  %v3070_v32 = vunpack.i.l.bf16 %v3069_v25 }
 0x4ea   :  { %v3147_v26 = vpop.eup %3146  ;;  %v2975_v42 = vpack.c.bf16 %v3071_v31, %v3070_v32 }
 0x4eb   :  { %v463_v34 = vmul.f32 %v3147_v26, %v3493_v27 }
 0x4ef   :  { %v750_v11 = vpop.xlane.xlu0 %749 }
 0x4f3   :  { %v343_v12 = vpop.xlane.xlu0 %342 }
 0x4f4   :  { %3148 = vrcp.f32 %v343_v12 }
 0x4f7   :  { %v747_v14 = vpop.xlane.xlu0 %746 }
 0x4fb   :  { %v456_v16 = vpop.xlane.xlu0 %455 }
 0x4fc   :  { %3150 = vrcp.f32 %v456_v16 }
 0x4fd   :  { %3152 = vrcp.f32 %v346_v10 }
 0x4fe   :  { %3154 = vrcp.f32 %v747_v14  ;;  %v3149_v29 = vpop.eup %3148 }
 0x4ff   :  { %v3059_v18 = vpop.permute.xlu0 %3058  ;;  %v349_v41 = vmul.f32 %v3149_v29, %v339_v59  ;;  %3156 = vrcp.f32 %v750_v11  ;;  %v2584_v29 = vld [vmem:[#allocation7 + $0x2] ss:$0 sm:$0xff] }
 0x500   :  { %v3061_v21 = vunpack.i.h.bf16 %v3059_v18  ;;  %v3060_v22 = vunpack.i.l.bf16 %v3059_v18 }
 0x502   :  { %v2961_v24 = vpack.c.bf16 %v3061_v21, %v3060_v22 }
 0x504   :  { %2962 = vmatprep.subr.bf16.mxu1 %v2961_v24 }
 0x505   :  { %2964 = vmatpush3.bf16.msra.mxu1 %v2961_v24  ;;  %v3105_v24 = vld [vmem:[#allocation5 + $0x68] sm:$0xff]  }
 0x506   :  { %v3151_v30 = vpop.eup %3150  ;;  %2966 = vmatprep.subr.bf16.mxu1 %v2965_v28  ;;  %2816 = vmatpush3.bf16.msra.mxu0 %v3105_v24  ;;  %v2587_v24 = vld [vmem:[%s3800_s2 + $0x1] ss:$0 sm:$0xff] }
 0x507   :  { %v462_v33 = vmul.f32 %v3151_v30, %v452_v5  ;;  %v3153_v44 = vpop.eup %3152  ;;  %2821 = vmatprep.subr.bf16.mxu0 %v3311_v15 }
 0x508   :  { %v3155_v46 = vpop.eup %3154  ;;  %v350_v49 = vmul.f32 %v3153_v44, %v3500_v37 }
 0x509   :  { %2775 = vmatprep.mubr.msk.f32.mxu1 %vm326_vm10, %v462_v33  ;;  %v753_v27 = vmul.f32 %v3155_v46, %v743_v2  ;;  %v3157_v50 = vpop.eup %3156 }
 0x50a   :  { %2776 = vmatmul.mubr.msk.f32.vlgmr.msra.gmra.mrb[8].mxu1 %vm326_vm10, %v463_v34  ;;  %v754_v37 = vmul.f32 %v3157_v50, %v3513_v54 }
 0x50b   :  { %2968 = vmatpush3.bf16.msra.mxu1 %v2965_v28  ;;  %2782 = vmatprep.mubr.msk.f32.mxu1 %vm326_vm10, %v349_v41 }
 0x50c   :  { %2976 = vmatprep.subr.bf16.mxu1 %v2975_v42 }
 0x512   :  { %2783 = vmatmul.mubr.msk.f32.vlgmr.msra.gmra.mrb[8].mxu1 %vm326_vm10, %v350_v49 }
 0x513   :  { %2978 = vmatpush3.bf16.msra.mxu1 %v2975_v42  ;;  %2796 = vmatprep.mubr.msk.f32.mxu1 %vm326_vm10, %v753_v27 }
 0x514   :  { %2981 = vmatprep.subr.msk.bf16.mxu1 %vm3440_vm9, %v3444_v53 }
 0x51a   :  { %2797 = vmatmul.mubr.msk.f32.vlgmr.msra.gmra.mrb[8].mxu1 %vm326_vm10, %v754_v37 }
 0x51b   :  { %2803 = vmatprep.mubr.msk.f32.mxu1 %vm132_vm0, %v852_v35 }
 0x51c   :  { %2984 = vmatpush3.bf16.xpose.msk.msra.mxu1 %vm3440_vm9, %v3444_v53 }
 0x523   :  { %2804 = vmatmul.mubr.msk.f32.vlgmr.msra.gmra.mrb[10].mxu1 %vm132_vm0, %v853_v56 }
 0x5f6   :  { %v2805_v57 = vpop.f32.mrb[10].mxu1 }
 0x5f7   :  { %v926_v58 = vpop.f32.mrb[11].mxu1  ;;  %v938_v54 = vsel %vm326_vm10, %v2805_v57, -inf }
 0x5f8   :  { %939 = vmax.xlane.f32.xlu0 %v938_v54  ;;  %v935_v59 = vsel %vm326_vm10, %v926_v58, -inf }
 0x5f9   :  { %936 = vmax.xlane.f32.xlu1 %v935_v59  ;;  %v3106_v59 = vld [vmem:[#allocation5 + $0x10] sm:$0xff]  }
 0x60e   :  { %960 = vrot.lane.b32.xlu0 %v3550_v51, %s3305_s25 }
 0x685   :  { %v940_v60 = vpop.xlane.xlu0 %939 }
 0x686   :  { %v942_v61 = vsub.f32 %v2805_v57, %v940_v60  ;;  %v937_v62 = vpop.xlane.xlu1 %936  ;;  %v3107_v60 = vld [vmem:[#allocation5 + $0x18] sm:$0xff]  }
 0x687   :  { %v941_v53 = vsub.f32 %v926_v58, %v937_v62  ;;  %v3109_v62 = vld [vmem:[#allocation5 + $0x28] sm:$0xff]  }
 0x688   :  { %v945_v63 = vmul.f32 1.442695, %v942_v61  ;;  %v3108_v61 = vld [vmem:[#allocation5 + $0x20] sm:$0xff]  }
 0x689   :  { %v943_v2 = vmul.f32 1.442695, %v941_v53  ;;  %v3571_v9 = vpop.permute.xlu0 %960  ;;  %v3110_v53 = vld [vmem:[#allocation5 + $0x30] sm:$0xff]  }
 0x68a   :  { %3158 = vpow2.f32 %v945_v63  ;;  %v963_v10 = vmul.f32 %v3571_v9, %v3416_v40  ;;  %v964_v11 = vmul.f32 %v3571_v9, %v3418_v43  ;;  %v3111_v63 = vld [vmem:[#allocation5 + $0x38] sm:$0xff]  }
 0x68b   :  { %3160 = vpow2.f32 %v943_v2  ;;  %v3112_v2 = vld [vmem:[#allocation5 + $0x40] sm:$0xff]  }
 0x68c   :  { %v3072_v12 = vpack.i.bf16 %v964_v11, %v963_v10 }
 0x694   :  { %v3159_v3 = vpop.eup %3158 }
 0x695   :  { %v3161_v4 = vpop.eup %3160  ;;  %v948_v5 = vmul.f32 %v3159_v3, %v3490_v23  ;;  %v3113_v3 = vld [vmem:[#allocation5 + $0x48] sm:$0xff]  }
 0x696   :  { %v947_v7 = vmul.f32 %v3161_v4, %v3516_v55 }
 0x697   :  { %v952_v6 = vsel %vm326_vm10, %v948_v5, 0.0 }
 0x698   :  { %953 = vadd.xlane.f32.xlu1 %v952_v6  ;;  %v949_v8 = vsel %vm326_vm10, %v947_v7, 0.0 }
 0x69c   :  { %950 = vadd.xlane.f32.xlu1 %v949_v8 }
 0x6ad   :  { %3073 = vrot.lane.b32.xlu1 %v3072_v12, %s3305_s25 }
 0x725   :  { %v954_v14 = vpop.xlane.xlu1 %953 }
 0x726   :  { %3162 = vrcp.f32 %v954_v14 }
 0x729   :  { %v951_v16 = vpop.xlane.xlu1 %950 }
 0x72a   :  { %3164 = vrcp.f32 %v951_v16 }
 0x72d   :  { %v3074_v17 = vpop.permute.xlu1 %3073 }
 0x72e   :  { %v3076_v18 = vunpack.i.h.bf16 %v3074_v17  ;;  %v3075_v19 = vunpack.i.l.bf16 %v3074_v17 }
 0x730   :  { %v2985_v20 = vpack.c.bf16 %v3076_v18, %v3075_v19  ;;  %v3163_v40 = vpop.eup %3162  ;;  %v2586_v18 = vld [vmem:[#allocation7 + $0x4] ss:$0 sm:$0xff] }
 0x731   :  { %v958_v22 = vmul.f32 %v3163_v40, %v948_v5 }
 0x732   :  { %2986 = vmatprep.subr.bf16.mxu1 %v2985_v20 }
 0x733   :  { %2988 = vmatpush3.bf16.msra.mxu1 %v2985_v20 }
 0x734   :  { %v3165_v21 = vpop.eup %3164  ;;  %2829 = vmatprep.subr.bf16.mxu1 %v3311_v15 }
 0x735   :  { %v957_v43 = vmul.f32 %v3165_v21, %v947_v7 }
 0x737   :  { %2810 = vmatprep.mubr.msk.f32.mxu1 %vm326_vm10, %v957_v43  ;;  %v3114_v43 = vld [vmem:[#allocation5 + $0x50] sm:$0xff]  }
 0x738   :  { %2811 = vmatmul.mubr.msk.f32.vlgmr.msra.gmra.mrb[8].mxu1 %vm326_vm10, %v958_v22  ;;  %v3115_v22 = vld [vmem:[#allocation5 + $0x58] sm:$0xff]  }
 0x739   :  { %2845 = vmatprep.mubr.msk.bf16.mxu1 %vm3312_vm1, %v3311_v15  ;;  %2830 = vmatpush3.bf16.msra.mxu1 %v3108_v61 }
 0x73a   :  { %2831 = vmatprep.subr.bf16.mxu1 %v3311_v15 }
 0x73d   :  { %2832 = vmatpush3.bf16.msra.mxu1 %v3109_v62 }
 0x73e   :  { %2833 = vmatprep.subr.bf16.mxu1 %v3311_v15 }
 0x741   :  { %2834 = vmatpush3.bf16.msra.mxu1 %v3110_v53 }
 0x742   :  { %2835 = vmatprep.subr.bf16.mxu1 %v3311_v15 }
 0x745   :  { %2836 = vmatpush3.bf16.msra.mxu1 %v3111_v63 }
 0x746   :  { %2837 = vmatprep.subr.bf16.mxu1 %v3311_v15 }
 0x749   :  { %2838 = vmatpush3.bf16.msra.mxu1 %v3112_v2  ;;  %v3116_v2 = vld [vmem:[#allocation5 + $0x70] sm:$0xff]  }
 0x74a   :  { %2839 = vmatprep.subr.bf16.mxu1 %v3311_v15 }
 0x74d   :  { %2840 = vmatpush3.bf16.msra.mxu1 %v3113_v3  ;;  %v3117_v3 = vld [vmem:[#allocation5 + $0x78] sm:$0xff]  }
 0x74e   :  { %2841 = vmatprep.subr.bf16.mxu1 %v3311_v15 }
 0x751   :  { %2842 = vmatpush3.bf16.msra.mxu1 %v3114_v43  ;;  %v2602_v43 = vld [vmem:[%s3800_s2 + $0x2] ss:$0 sm:$0xff] }
 0x752   :  { %2843 = vmatprep.subr.bf16.mxu1 %v3311_v15 }
 0x755   :  { %2844 = vmatpush3.bf16.msra.mxu1 %v3115_v22 }
 0x80b   :  { %v2812_v25 = vpop.f32.mrb[8].mxu1 }
 0x80c   :  { %v1045_v26 = vpop.f32.mrb[9].mxu1 }
 0x80d   :  { %v1056_v28 = vpack.c.bf16 %v2812_v25, %v1045_v26 }
 0x80f   :  { %2818 = vmatmul.mubr.msk.bf16.vlgmr.msra.gmra.mrb[4].mxu0 %vm132_vm0, %v1056_v28 }
 0x810   :  { %2825 = vmatprep.mubr.msk.bf16.mxu0 %vm3312_vm1, %v3311_v15  ;;  %2822 = vmatpush3.bf16.msra.mxu0 %v3106_v59 }
 0x811   :  { %2823 = vmatprep.subr.bf16.mxu0 %v3311_v15 }
 0x814   :  { %2824 = vmatpush3.bf16.msra.mxu0 %v3107_v60 }
 0x815   :  { %2849 = vmatprep.subr.bf16.mxu0 %v3311_v15 }
 0x8e2   :  { %v1106_v30 = vpop.f32.mrb[4].mxu0 }
 0x8e3   :  { %v1113_v31 = vadd.f32 %v1106_v30, %v3384_v0  ;;  %v2819_v32 = vpop.f32.mrb[5].mxu0 }
 0x8e4   :  { %v1109_v33 = vpop.f32.mrb[6].mxu0 }
 0x8e5   :  { %v3589_v34 = vadd.f32 %v2584_v29, %v1113_v31  ;;  %v1114_v41 = vadd.f32 %v1109_v33, %v3386_v1  ;;  %v2820_v42 = vpop.f32.mrb[7].mxu0 }
 0x8e6   :  { %v2599_v42 = vld [vmem:[#allocation7 + $0x5] ss:$0 sm:$0xff] }
 0x8e7   :  { %v3592_v44 = vadd.f32 %v2584_v29, %v1114_v41  ;;  %v1121_v46 = vsel %vm132_vm0, %v3589_v34, 0.0 }
 0x8e8   :  { %1122 = vadd.xlane.f32.xlu0 %v1121_v46 }
 0x8e9   :  { %v1124_v49 = vsel %vm132_vm0, %v3592_v44, 0.0 }
 0x8ea   :  { %1125 = vadd.xlane.f32.xlu1 %v1124_v49 }
 0x975   :  { %v1123_v27 = vpop.xlane.xlu0 %1122 }
 0x976   :  { %v1127_v50 = vmul.f32 0.03125, %v1123_v27 }
 0x977   :  { %v1126_v0 = vpop.xlane.xlu1 %1125 }
 0x978   :  { %v1129_v37 = vsub.f32 %v3589_v34, %v1127_v50  ;;  %v1128_v35 = vmul.f32 0.03125, %v1126_v0 }
 0x97a   :  { %v1130_v56 = vsub.f32 %v3592_v44, %v1128_v35  ;;  %v1131_v1 = vmul.f32 %v1129_v37, %v1129_v37 }
 0x97c   :  { %v1133_v57 = vsel %vm132_vm0, %v1131_v1, 0.0  ;;  %v1132_v58 = vmul.f32 %v1130_v56, %v1130_v56 }
 0x97d   :  { %1134 = vadd.xlane.f32.xlu0 %v1133_v57 }
 0x97e   :  { %v1136_v54 = vsel %vm132_vm0, %v1132_v58, 0.0 }
 0x981   :  { %1137 = vadd.xlane.f32.xlu0 %v1136_v54 }
 0xa0a   :  { %v1135_v4 = vpop.xlane.xlu0 %1134 }
 0xa0b   :  { %v1139_v5 = vmul.f32 0.03125, %v1135_v4 }
 0xa0d   :  { %v1141_v6 = vadd.f32 1e-05, %v1139_v5 }
 0xa0e   :  { %v1138_v7 = vpop.xlane.xlu0 %1137 }
 0xa0f   :  { %3166 = vrsqrt.f32 %v1141_v6  ;;  %v1140_v8 = vmul.f32 0.03125, %v1138_v7 }
 0xa11   :  { %v1142_v10 = vadd.f32 1e-05, %v1140_v8 }
 0xa13   :  { %3168 = vrsqrt.f32 %v1142_v10 }
 0xa19   :  { %v3167_v11 = vpop.eup %3166 }
 0xa1a   :  { %v1145_v12 = vmul.f32 %v3167_v11, %v1129_v37 }
 0xa1c   :  { %v1151_v16 = vmul.f32 %v2585_v13, %v1145_v12 }
 0xa1d   :  { %v3169_v14 = vpop.eup %3168 }
 0xa1e   :  { %v1146_v17 = vmul.f32 %v3169_v14, %v1130_v56  ;;  %v1157_v20 = vadd.f32 %v2586_v18, %v1151_v16 }
 0xa20   :  { %v1152_v19 = vmul.f32 %v2585_v13, %v1146_v17  ;;  %v2600_v13 = vld [vmem:[#allocation7 + $0x6] ss:$0 sm:$0xff] }
 0xa22   :  { %v1158_v40 = vadd.f32 %v2586_v18, %v1152_v19  ;;  %v2601_v18 = vld [vmem:[#allocation7 + $0x7] ss:$0 sm:$0xff] }
 0xa24   :  { %v1159_v21 = vpack.c.bf16 %v1158_v40, %v1157_v20 }
 0xa26   :  { %2826 = vmatmul.mubr.msk.bf16.vlgmr.msra.gmra.mrb[8].mxu0 %vm132_vm0, %v1159_v21 }
 0xa27   :  { %2853 = vmatprep.mubr.msk.bf16.mxu0 %vm3312_vm1, %v3311_v15  ;;  %2850 = vmatpush3.bf16.msra.mxu0 %v3116_v2 }
 0xa28   :  { %2851 = vmatprep.subr.bf16.mxu0 %v3311_v15 }
 0xa2b   :  { %2852 = vmatpush3.bf16.msra.mxu0 %v3117_v3 }
 0xaf9   :  { %v1213_v25 = vpop.f32.mrb[8].mxu0 }
 0xafa   :  { %v1214_v26 = vadd.f32 %v2587_v24, %v1213_v25  ;;  %v2827_v28 = vpop.f32.mrb[9].mxu0 }
 0xafb   :  { %v1216_v29 = vpop.f32.mrb[10].mxu0 }
 0xafc   :  { %v1217_v30 = vadd.f32 %v2587_v24, %v1216_v29  ;;  %v2828_v31 = vpop.f32.mrb[11].mxu0  ;;  %v1220_v32 = vmax.f32 %v1214_v26, 0.0 }
 0xafe   :  { %v1221_v33 = vmax.f32 %v1217_v30, 0.0 }
 0xb00   :  { %v1222_v41 = vpack.c.bf16 %v1221_v33, %v1220_v32 }
 0xb02   :  { %2846 = vmatmul.mubr.bf16.vlgmr.msra.gmra.mrb[12].mxu1 %v1222_v41 }
 0xbd5   :  { %v1305_v46 = vpop.f32.mrb[12].mxu1 }
 0xbd6   :  { %v1312_v49 = vadd.f32 %v1305_v46, %v3589_v34  ;;  %v2847_v27 = vpop.f32.mrb[13].mxu1 }
 0xbd7   :  { %v1308_v50 = vpop.f32.mrb[14].mxu1 }
 0xbd8   :  { %v3618_v0 = vadd.f32 %v2599_v42, %v1312_v49  ;;  %v1313_v37 = vadd.f32 %v1308_v50, %v3592_v44  ;;  %v2848_v35 = vpop.f32.mrb[15].mxu1 }
 0xbda   :  { %v3621_v56 = vadd.f32 %v2599_v42, %v1313_v37  ;;  %v1356_v1 = vsel %vm132_vm0, %v3618_v0, 0.0 }
 0xbdb   :  { %1357 = vadd.xlane.f32.xlu0 %v1356_v1 }
 0xbdc   :  { %v1359_v57 = vsel %vm132_vm0, %v3621_v56, 0.0 }
 0xbdf   :  { %1360 = vadd.xlane.f32.xlu0 %v1359_v57 }
 0xc68   :  { %v1358_v58 = vpop.xlane.xlu0 %1357 }
 0xc69   :  { %v1362_v54 = vmul.f32 0.03125, %v1358_v58 }
 0xc6b   :  { %v1364_v34 = vsub.f32 %v3618_v0, %v1362_v54 }
 0xc6c   :  { %v1361_v59 = vpop.xlane.xlu0 %1360 }
 0xc6d   :  { %v1363_v60 = vmul.f32 0.03125, %v1361_v59  ;;  %v1366_v61 = vmul.f32 %v1364_v34, %v1364_v34 }
 0xc6f   :  { %v1365_v44 = vsub.f32 %v3621_v56, %v1363_v60  ;;  %v1368_v62 = vsel %vm132_vm0, %v1366_v61, 0.0 }
 0xc70   :  { %1369 = vadd.xlane.f32.xlu1 %v1368_v62 }
 0xc71   :  { %v1367_v53 = vmul.f32 %v1365_v44, %v1365_v44 }
 0xc73   :  { %v1371_v63 = vsel %vm132_vm0, %v1367_v53, 0.0 }
 0xc74   :  { %1372 = vadd.xlane.f32.xlu0 %v1371_v63 }
 0xcfd   :  { %v1370_v4 = vpop.xlane.xlu1 %1369 }
 0xcfe   :  { %v1374_v5 = vmul.f32 0.03125, %v1370_v4 }
 0xd00   :  { %v1376_v6 = vadd.f32 1e-05, %v1374_v5 }
 0xd01   :  { %v1373_v7 = vpop.xlane.xlu0 %1372 }
 0xd02   :  { %3170 = vrsqrt.f32 %v1376_v6  ;;  %v1375_v8 = vmul.f32 0.03125, %v1373_v7 }
 0xd04   :  { %v1377_v10 = vadd.f32 1e-05, %v1375_v8 }
 0xd06   :  { %3172 = vrsqrt.f32 %v1377_v10 }
 0xd0c   :  { %v3171_v11 = vpop.eup %3170 }
 0xd0d   :  { %v1380_v12 = vmul.f32 %v3171_v11, %v1364_v34 }
 0xd0f   :  { %v1386_v16 = vmul.f32 %v2600_v13, %v1380_v12 }
 0xd10   :  { %v3173_v14 = vpop.eup %3172 }
 0xd11   :  { %v1381_v17 = vmul.f32 %v3173_v14, %v1365_v44  ;;  %v1392_v20 = vadd.f32 %v2601_v18, %v1386_v16 }
 0xd13   :  { %v1387_v19 = vmul.f32 %v2600_v13, %v1381_v17 }
 0xd15   :  { %v1393_v40 = vadd.f32 %v2601_v18, %v1387_v19 }
 0xd17   :  { %v1394_v21 = vpack.c.bf16 %v1393_v40, %v1392_v20 }
 0xd19   :  { %2854 = vmatmul.mubr.msk.bf16.vlgmr.msra.gmra.mrb[12].mxu0 %vm132_vm0, %v1394_v21 }
 0xdec   :  { %v1448_v22 = vpop.f32.mrb[12].mxu0 }
 0xded   :  { %v1449_v24 = vadd.f32 %v2602_v43, %v1448_v22  ;;  %v2855_v25 = vpop.f32.mrb[13].mxu0 }
 0xdee   :  { %v1451_v26 = vpop.f32.mrb[14].mxu0 }
 0xdef   :  { %v1452_v28 = vadd.f32 %v2602_v43, %v1451_v26  ;;  %v2856_v29 = vpop.f32.mrb[15].mxu0  ;;  %v1455_v30 = vmul.f32 %v3411_v38, %v1449_v24  ;;  %v1861_v31 = vmul.f32 %v3414_v39, %v1449_v24  ;;  %v1681_v33 = vmul.f32 %v1449_v24, %v3497_v36 }
 0xdf0   :  { %v1968_v42 = vmul.f32 %v1449_v24, %v3506_v47  ;;  %v2168_v49 = vmul.f32 %v1449_v24, %v3571_v9  ;;  %v3648_v50 = vmul.f32 %v1449_v24, %v3504_v45  ;;  %v1574_v59 = vmul.f32 %v3432_v48, %v1449_v24 }
 0xdf1   :  { %2861 = vmatprep.mubr.msk.f32.mxu0 %vm132_vm0, %v1455_v30  ;;  %2889 = vmatprep.mubr.msk.f32.mxu1 %vm132_vm0, %v1861_v31  ;;  %v3077_v32 = vpack.i.bf16 %v1452_v28, %v1449_v24  ;;  %v1682_v41 = vmul.f32 %v1452_v28, %v3497_v36  ;;  %v1969_v46 = vmul.f32 %v1452_v28, %v3506_v47 }
 0xdf2   :  { %v2169_v27 = vmul.f32 %v1452_v28, %v3571_v9  ;;  %v3651_v37 = vmul.f32 %v1452_v28, %v3504_v45  ;;  %v1456_v45 = vmul.f32 %v3411_v38, %v1452_v28  ;;  %v1862_v9 = vmul.f32 %v3414_v39, %v1452_v28 }
 0xdf3   :  { %3078 = vrot.lane.b32.xlu1 %v3077_v32, %s3313_s29  ;;  %v3082_v35 = vpack.i.bf16 %v1682_v41, %v1681_v33  ;;  %v3092_v1 = vpack.i.bf16 %v1969_v46, %v1968_v42  ;;  %v2061_v60 = vmul.f32 %v3550_v51, %v1449_v24  ;;  %v1575_v38 = vmul.f32 %v3432_v48, %v1452_v28 }
 0xdf4   :  { %v3097_v57 = vpack.i.bf16 %v2169_v27, %v2168_v49  ;;  %v3087_v36 = vpack.i.bf16 %v3651_v37, %v3648_v50  ;;  %v2062_v39 = vmul.f32 %v3550_v51, %v1452_v28 }
 0xe65   :  { %v3079_v58 = vpop.permute.xlu1 %3078 }
 0xe66   :  { %v3081_v47 = vunpack.i.h.bf16 %v3079_v58  ;;  %v3080_v54 = vunpack.i.l.bf16 %v3079_v58 }
 0xe68   :  { %v2989_v34 = vpack.c.bf16 %v3081_v47, %v3080_v54 }
 0xe6a   :  { %2991 = vmatprep.subr.msk.bf16.mxu0 %vm3440_vm9, %v2989_v34  ;;  %3011 = vmatprep.subr.msk.bf16.mxu1 %vm3440_vm9, %v2989_v34 }
 0xe6b   :  { %2994 = vmatpush3.bf16.xpose.msk.msra.mxu0 %vm3440_vm9, %v2989_v34  ;;  %3014 = vmatpush3.bf16.xpose.msk.msra.mxu1 %vm3440_vm9, %v2989_v34 }
 0xe6c   :  { %2997 = vmatprep.subr.msk.bf16.mxu0 %vm3440_vm9, %v2989_v34  ;;  %3021 = vmatprep.subr.msk.bf16.mxu1 %vm3440_vm9, %v2989_v34 }
 0xe72   :  { %2862 = vmatmul.mubr.msk.f32.vlgmr.msra.gmra.mrb[2].mxu0 %vm132_vm0, %v1456_v45  ;;  %2890 = vmatmul.mubr.msk.f32.vlgmr.msra.gmra.mrb[16].mxu1 %vm132_vm0, %v1862_v9 }
 0xe73   :  { %3000 = vmatpush3.bf16.xpose.msk.msra.mxu0 %vm3440_vm9, %v2989_v34  ;;  %2868 = vmatprep.mubr.msk.f32.mxu0 %vm132_vm0, %v1574_v59 }
 0xe74   :  { %3024 = vmatpush3.bf16.xpose.msk.msra.mxu1 %vm3440_vm9, %v2989_v34  ;;  %2903 = vmatprep.mubr.msk.f32.mxu1 %vm132_vm0, %v2061_v60 }
 0xe75   :  { %2921 = vmatprep.subr.bf16.mxu1 %v3311_v15 }
 0xe7a   :  { %2869 = vmatmul.mubr.msk.f32.vlgmr.msra.gmra.mrb[16].mxu0 %vm132_vm0, %v1575_v38 }
 0xe7b   :  { %2904 = vmatmul.mubr.msk.f32.vlgmr.msra.gmra.mrb[18].mxu1 %vm132_vm0, %v2062_v39 }
 0xe7c   :  { %2925 = vmatprep.mubr.msk.bf16.mxu1 %vm3312_vm1, %v3311_v15 }
 0xf45   :  { %v2863_v61 = vpop.f32.mrb[2].mxu0  ;;  %v2891_v44 = vpop.f32.mrb[16].mxu1 }
 0xf46   :  { %v1539_v62 = vpop.f32.mrb[3].mxu0  ;;  %v1935_v52 = vpop.f32.mrb[17].mxu1  ;;  %v1551_v6 = vsel %vm326_vm10, %v2863_v61, -inf  ;;  %v1947_v7 = vsel %vm326_vm10, %v2891_v44, -inf }
 0xf47   :  { %v1944_v53 = vsel %vm326_vm10, %v1935_v52, -inf  ;;  %v1548_v5 = vsel %vm326_vm10, %v1539_v62, -inf }
 0xf48   :  { %1945 = vmax.xlane.f32.xlu1 %v1944_v53 }
 0xf4d   :  { %v2870_v63 = vpop.f32.mrb[16].mxu0 }
 0xf4e   :  { %v2905_v2 = vpop.f32.mrb[18].mxu1  ;;  %v1648_v3 = vpop.f32.mrb[17].mxu0  ;;  %v1660_v4 = vsel %vm326_vm10, %v2870_v63, -inf }
 0xf4f   :  { %v3687_v48 = vpop.f32.mrb[19].mxu1  ;;  %v1657_v51 = vsel %vm326_vm10, %v1648_v3, -inf  ;;  %v2147_v10 = vsel %vm326_vm10, %v2905_v2, -inf }
 0xf50   :  { %1658 = vmax.xlane.f32.xlu0 %v1657_v51  ;;  %v2144_v8 = vsel %vm326_vm10, %v3687_v48, -inf }
 0xf54   :  { %1661 = vmax.xlane.f32.xlu0 %v1660_v4 }
 0xf58   :  { %1549 = vmax.xlane.f32.xlu0 %v1548_v5 }
 0xf59   :  { %3083 = vrot.lane.b32.xlu1 %v3082_v35, %s3305_s25 }
 0xf5c   :  { %1552 = vmax.xlane.f32.xlu0 %v1551_v6 }
 0xf5d   :  { %3093 = vrot.lane.b32.xlu1 %v3092_v1, %s3305_s25 }
 0xf60   :  { %1948 = vmax.xlane.f32.xlu0 %v1947_v7 }
 0xf61   :  { %3098 = vrot.lane.b32.xlu1 %v3097_v57, %s3305_s25 }
 0xf64   :  { %2145 = vmax.xlane.f32.xlu0 %v2144_v8 }
 0xf68   :  { %2148 = vmax.xlane.f32.xlu0 %v2147_v10 }
 0xfd5   :  { %v1946_v11 = vpop.xlane.xlu1 %1945 }
 0xfd6   :  { %v1950_v25 = vsub.f32 %v1935_v52, %v1946_v11 }
 0xfd8   :  { %v1952_v30 = vmul.f32 1.442695, %v1950_v25 }
 0xfd9   :  { %v3084_v12 = vpop.permute.xlu1 %3083 }
 0xfda   :  { %v3086_v13 = vunpack.i.h.bf16 %v3084_v12  ;;  %v3085_v14 = vunpack.i.l.bf16 %v3084_v12 }
 0xfdc   :  { %v3001_v16 = vpack.c.bf16 %v3086_v13, %v3085_v14 }
 0xfdd   :  { %v1659_v17 = vpop.xlane.xlu0 %1658  ;;  %v3094_v13 = vpop.permute.xlu1 %3093 }
 0xfde   :  { %3002 = vmatprep.subr.bf16.mxu0 %v3001_v16  ;;  %v1663_v49 = vsub.f32 %v1648_v3, %v1659_v17 }
 0xfdf   :  { %3004 = vmatpush3.bf16.msra.mxu0 %v3001_v16 }
 0xfe0   :  { %v1665_v47 = vmul.f32 1.442695, %v1663_v49 }
 0xfe1   :  { %v1662_v18 = vpop.xlane.xlu0 %1661 }
 0xfe2   :  { %v1664_v31 = vsub.f32 %v2870_v63, %v1662_v18 }
 0xfe4   :  { %v1667_v33 = vmul.f32 1.442695, %v1664_v31 }
 0xfe5   :  { %v1550_v19 = vpop.xlane.xlu0 %1549 }
 0xfe6   :  { %v1554_v20 = vsub.f32 %v1539_v62, %v1550_v19  ;;  %v3095_v19 = vunpack.i.l.bf16 %v3094_v13 }
 0xfe8   :  { %v1556_v22 = vmul.f32 1.442695, %v1554_v20 }
 0xfe9   :  { %v1553_v40 = vpop.xlane.xlu0 %1552 }
 0xfea   :  { %v1555_v21 = vsub.f32 %v2863_v61, %v1553_v40 }
 0xfec   :  { %v1558_v43 = vmul.f32 1.442695, %v1555_v21 }
 0xfed   :  { %v1949_v24 = vpop.xlane.xlu0 %1948 }
 0xfee   :  { %3174 = vpow2.f32 %v1558_v43  ;;  %v1951_v26 = vsub.f32 %v2891_v44, %v1949_v24  ;;  %v3099_v24 = vpop.permute.xlu1 %3098 }
 0xfef   :  { %3176 = vpow2.f32 %v1556_v22 }
 0xff0   :  { %v1954_v28 = vmul.f32 1.442695, %v1951_v26 }
 0xff1   :  { %v2146_v29 = vpop.xlane.xlu0 %2145 }
 0xff2   :  { %3178 = vpow2.f32 %v1954_v28  ;;  %v2150_v54 = vsub.f32 %v3687_v48, %v2146_v29  ;;  %v3101_v28 = vunpack.i.h.bf16 %v3099_v24  ;;  %v3100_v29 = vunpack.i.l.bf16 %v3099_v24 }
 0xff3   :  { %3180 = vpow2.f32 %v1952_v30 }
 0xff4   :  { %3182 = vpow2.f32 %v1667_v33  ;;  %v2152_v59 = vmul.f32 1.442695, %v2150_v54  ;;  %v2633_v54 = vld [vmem:[#allocation7 + $0x8] ss:$0 sm:$0xff] }
 0xff5   :  { %v2149_v32 = vpop.xlane.xlu0 %2148 }
 0xff6   :  { %v2151_v41 = vsub.f32 %v2905_v2, %v2149_v32  ;;  %v3025_v32 = vpack.c.bf16 %v3101_v28, %v3100_v29  ;;  %v3129_v28 = vld [vmem:[#allocation5 + $0xc8] sm:$0xff]   ;;  %v2636_v29 = vld [vmem:[%s3800_s2 + $0x3] ss:$0 sm:$0xff]  ;;  %s3276_s2 = scalar_lea.vmem %s2533_s10, 256 }
 0xff7   :  { %p3277_p10 = scmp.ne.s32.totalorder %s2533_s10, %s3276_s2  ;;  %p3282_p12 = scmp.lt.s32.totalorder %s3276_s2, %s3276_s2 }
 0xff8   :  { %v3175_v42 = vpop.eup %3174  ;;  %v2154_v27 = vmul.f32 1.442695, %v2151_v41 }
 0xff9   :  { %v3701_v46 = vmul.f32 %v3175_v42, %v3490_v23  ;;  %v3177_v35 = vpop.eup %3176  ;;  %p3283_p13 = por %p3282_p12, %p3281_p11 }
 0xffa   :  { %3184 = vpow2.f32 %v2154_v27  ;;  %v1560_v45 = vmul.f32 %v3177_v35, %v3516_v55  ;;  %v3118_v27 = vld [vmem:[#allocation5 + $0xd0] sm:$0xff]  }
 0xffb   :  { %v1565_v1 = vsel %vm326_vm10, %v3701_v46, 0.0  ;;  %3186 = vpow2.f32 %v1665_v47  ;;  %p3284_p0 = pnand %p3283_p13, %p3277_p10 }
 0xffc   :  { %v3179_v57 = vpop.eup %3178  ;;  %1566 = vadd.xlane.f32.xlu0 %v1565_v1  ;;  %v1562_v60 = vsel %vm326_vm10, %v1560_v45, 0.0  ;;  %3188 = vpow2.f32 %v2152_v59  ;;  %v3119_v1 = vld [vmem:[#allocation5 + $0xd8] sm:$0xff]  }
 0xffd   :  { %v3706_v58 = vmul.f32 %v3179_v57, %v3490_v23  ;;  %v3181_v9 = vpop.eup %3180 }
 0xffe   :  { %v3714_v38 = vmul.f32 %v3181_v9, %v3516_v55  ;;  %v3183_v39 = vpop.eup %3182 }
 0xfff   :  { %v1961_v34 = vsel %vm326_vm10, %v3706_v58, 0.0  ;;  %v1670_v44 = vmul.f32 %v3183_v39, %v3490_v23 }
0x1000   :  { %1962 = vadd.xlane.f32.xlu0 %v1961_v34  ;;  %v1958_v61 = vsel %vm326_vm10, %v3714_v38, 0.0 }
0x1001   :  { %v1674_v52 = vsel %vm326_vm10, %v1670_v44, 0.0 }
0x1004   :  { %1563 = vadd.xlane.f32.xlu0 %v1562_v60  ;;  %v3185_v62 = vpop.eup %3184 }
0x1005   :  { %v3721_v53 = vmul.f32 %v3185_v62, %v3490_v23  ;;  %v3187_v63 = vpop.eup %3186 }
0x1006   :  { %v1669_v3 = vmul.f32 %v3187_v63, %v3516_v55  ;;  %v3189_v48 = vpop.eup %3188 }
0x1007   :  { %v2161_v2 = vsel %vm326_vm10, %v3721_v53, 0.0  ;;  %v2156_v4 = vmul.f32 %v3189_v48, %v3516_v55 }
0x1008   :  { %1959 = vadd.xlane.f32.xlu0 %v1958_v61  ;;  %v1671_v51 = vsel %vm326_vm10, %v1669_v3, 0.0 }
0x1009   :  { %v2158_v5 = vsel %vm326_vm10, %v2156_v4, 0.0 }
0x100c   :  { %1675 = vadd.xlane.f32.xlu0 %v1674_v52 }
0x1010   :  { %2162 = vadd.xlane.f32.xlu0 %v2161_v2 }
0x1014   :  { %1672 = vadd.xlane.f32.xlu0 %v1671_v51 }
0x1018   :  { %2159 = vadd.xlane.f32.xlu0 %v2158_v5  ;;  %v3120_v5 = vld [vmem:[#allocation5 + $0x80] sm:$0xff]  }
0x1019   :  { %2922 = vmatpush3.bf16.msra.mxu1 %v3120_v5 }
0x101a   :  { %2923 = vmatprep.subr.bf16.mxu1 %v3311_v15 }
0x102e   :  { %3088 = vrot.lane.b32.xlu0 %v3087_v36, %s3305_s25  ;;  %v3096_v36 = vunpack.i.h.bf16 %v3094_v13 }
0x1030   :  { %v3015_v22 = vpack.c.bf16 %v3096_v36, %v3095_v19 }
0x1089   :  { %v1567_v23 = vpop.xlane.xlu0 %1566 }
0x108d   :  { %v1963_v6 = vpop.xlane.xlu0 %1962 }
0x1091   :  { %v1564_v7 = vpop.xlane.xlu0 %1563 }
0x1092   :  { %3190 = vrcp.f32 %v1564_v7  ;;  %v3123_v7 = vld [vmem:[#allocation5 + $0x98] sm:$0xff]  }
0x1095   :  { %v1960_v8 = vpop.xlane.xlu0 %1959 }
0x1099   :  { %v1676_v10 = vpop.xlane.xlu0 %1675 }
0x109a   :  { %3192 = vrcp.f32 %v1676_v10  ;;  %v3125_v10 = vld [vmem:[#allocation5 + $0xa8] sm:$0xff]  }
0x109c   :  { %v3191_v16 = vpop.eup %3190 }
0x109d   :  { %v2163_v11 = vpop.xlane.xlu0 %2162  ;;  %v1570_v43 = vmul.f32 %v3191_v16, %v1560_v45 }
0x10a1   :  { %v1673_v12 = vpop.xlane.xlu0 %1672 }
0x10a2   :  { %3194 = vrcp.f32 %v1673_v12  ;;  %v3127_v12 = vld [vmem:[#allocation5 + $0xb8] sm:$0xff]  }
0x10a3   :  { %3196 = vrcp.f32 %v1567_v23  ;;  %v3121_v23 = vld [vmem:[#allocation5 + $0x88] sm:$0xff]  }
0x10a4   :  { %3198 = vrcp.f32 %v1960_v8  ;;  %v3193_v50 = vpop.eup %3192  ;;  %2924 = vmatpush3.bf16.msra.mxu1 %v3121_v23  ;;  %v3124_v8 = vld [vmem:[#allocation5 + $0xa0] sm:$0xff]  }
0x10a5   :  { %v2160_v55 = vpop.xlane.xlu0 %2159  ;;  %v1680_v21 = vmul.f32 %v3193_v50, %v1670_v44  ;;  %3200 = vrcp.f32 %v1963_v6  ;;  %v3122_v6 = vld [vmem:[#allocation5 + $0x90] sm:$0xff]  }
0x10a6   :  { %3202 = vrcp.f32 %v2160_v55 }
0x10a7   :  { %3204 = vrcp.f32 %v2163_v11  ;;  %v3126_v11 = vld [vmem:[#allocation5 + $0xb0] sm:$0xff]  }
0x10a9   :  { %v3089_v14 = vpop.permute.xlu0 %3088 }
0x10aa   :  { %v3091_v17 = vunpack.i.h.bf16 %v3089_v14  ;;  %v3090_v18 = vunpack.i.l.bf16 %v3089_v14 }
0x10ac   :  { %v3195_v37 = vpop.eup %3194  ;;  %v3005_v20 = vpack.c.bf16 %v3091_v17, %v3090_v18 }
0x10ad   :  { %v1679_v40 = vmul.f32 %v3195_v37, %v1669_v3  ;;  %v3197_v25 = vpop.eup %3196  ;;  %v2634_v37 = vld [vmem:[#allocation7 + $0x9] ss:$0 sm:$0xff] }
0x10ae   :  { %3006 = vmatprep.subr.bf16.mxu0 %v3005_v20  ;;  %v3199_v26 = vpop.eup %3198  ;;  %v1571_v30 = vmul.f32 %v3197_v25, %v3701_v46 }
0x10af   :  { %2875 = vmatprep.mubr.msk.f32.mxu0 %vm326_vm10, %v1679_v40  ;;  %v1966_v31 = vmul.f32 %v3199_v26, %v3714_v38  ;;  %v3201_v33 = vpop.eup %3200  ;;  %v3128_v26 = vld [vmem:[#allocation5 + $0xc0] sm:$0xff]  }
0x10b0   :  { %2876 = vmatmul.mubr.msk.f32.vlgmr.msra.gmra.mrb[18].mxu0 %vm326_vm10, %v1680_v21  ;;  %v3203_v41 = vpop.eup %3202  ;;  %v1967_v42 = vmul.f32 %v3201_v33, %v3706_v58  ;;  %v2635_v21 = vld [vmem:[#allocation7 + $0xa] ss:$0 sm:$0xff] }
0x10b1   :  { %3008 = vmatpush3.bf16.msra.mxu0 %v3005_v20  ;;  %2882 = vmatprep.mubr.msk.f32.mxu0 %vm326_vm10, %v1570_v43  ;;  %v2166_v49 = vmul.f32 %v3203_v41, %v2156_v4  ;;  %v3205_v46 = vpop.eup %3204 }
0x10b2   :  { %3016 = vmatprep.subr.bf16.mxu0 %v3015_v22  ;;  %v2167_v35 = vmul.f32 %v3205_v46, %v3721_v53 }
0x10b8   :  { %2883 = vmatmul.mubr.msk.f32.vlgmr.msra.gmra.mrb[18].mxu0 %vm326_vm10, %v1571_v30 }
0x10b9   :  { %3018 = vmatpush3.bf16.msra.mxu0 %v3015_v22  ;;  %2896 = vmatprep.mubr.msk.f32.mxu0 %vm326_vm10, %v1966_v31 }
0x10ba   :  { %3026 = vmatprep.subr.bf16.mxu0 %v3025_v32 }
0x10c0   :  { %2897 = vmatmul.mubr.msk.f32.vlgmr.msra.gmra.mrb[18].mxu0 %vm326_vm10, %v1967_v42 }
0x10c1   :  { %3028 = vmatpush3.bf16.msra.mxu0 %v3025_v32  ;;  %2910 = vmatprep.mubr.msk.f32.mxu0 %vm326_vm10, %v2166_v49 }
0x10c2   :  { %2913 = vmatprep.subr.bf16.mxu0 %v3311_v15 }
0x10c8   :  { %2911 = vmatmul.mubr.msk.f32.vlgmr.msra.gmra.mrb[18].mxu0 %vm326_vm10, %v2167_v35  ;;  %v2648_v35 = vld [vmem:[#allocation7 + $0xb] ss:$0 sm:$0xff] }
0x10c9   :  { %2914 = vmatpush3.bf16.msra.mxu0 %v3118_v27  ;;  %2917 = vmatprep.mubr.msk.bf16.mxu0 %vm3312_vm1, %v3311_v15 }
0x10ca   :  { %2915 = vmatprep.subr.bf16.mxu0 %v3311_v15 }
0x10cd   :  { %2916 = vmatpush3.bf16.msra.mxu0 %v3119_v1 }
0x10ce   :  { %2929 = vmatprep.subr.bf16.mxu0 %v3311_v15 }
0x119b   :  { %v2912_v57 = vpop.f32.mrb[18].mxu0 }
0x119c   :  { %v2250_v58 = vpop.f32.mrb[19].mxu0 }
0x119d   :  { %v2261_v47 = vpack.c.bf16 %v2912_v57, %v2250_v58 }
0x119f   :  { %2918 = vmatmul.mubr.msk.bf16.vlgmr.msra.gmra.mrb[20].mxu0 %vm132_vm0, %v2261_v47 }
0x11a0   :  { %2945 = vmatprep.mubr.msk.bf16.mxu0 %vm3312_vm1, %v3311_v15  ;;  %2930 = vmatpush3.bf16.msra.mxu0 %v3122_v6 }
0x11a1   :  { %2931 = vmatprep.subr.bf16.mxu0 %v3311_v15 }
0x11a4   :  { %2932 = vmatpush3.bf16.msra.mxu0 %v3123_v7 }
0x11a5   :  { %2933 = vmatprep.subr.bf16.mxu0 %v3311_v15 }
0x11a8   :  { %2934 = vmatpush3.bf16.msra.mxu0 %v3124_v8 }
0x11a9   :  { %2935 = vmatprep.subr.bf16.mxu0 %v3311_v15 }
0x11ac   :  { %2936 = vmatpush3.bf16.msra.mxu0 %v3125_v10 }
0x11ad   :  { %2937 = vmatprep.subr.bf16.mxu0 %v3311_v15 }
0x11b0   :  { %2938 = vmatpush3.bf16.msra.mxu0 %v3126_v11 }
0x11b1   :  { %2939 = vmatprep.subr.bf16.mxu0 %v3311_v15 }
0x11b4   :  { %2940 = vmatpush3.bf16.msra.mxu0 %v3127_v12 }
0x11b5   :  { %2941 = vmatprep.subr.bf16.mxu0 %v3311_v15 }
0x11b8   :  { %2942 = vmatpush3.bf16.msra.mxu0 %v3128_v26 }
0x11b9   :  { %2943 = vmatprep.subr.bf16.mxu0 %v3311_v15 }
0x11bc   :  { %2944 = vmatpush3.bf16.msra.mxu0 %v3129_v28 }
0x1272   :  { %v2311_v34 = vpop.f32.mrb[20].mxu0 }
0x1273   :  { %v2318_v45 = vadd.f32 %v2311_v34, %v3618_v0  ;;  %v2919_v9 = vpop.f32.mrb[21].mxu0 }
0x1274   :  { %v2314_v59 = vpop.f32.mrb[22].mxu0 }
0x1275   :  { %v3754_v60 = vadd.f32 %v2633_v54, %v2318_v45  ;;  %v2319_v38 = vadd.f32 %v2314_v59, %v3621_v56  ;;  %v2920_v39 = vpop.f32.mrb[23].mxu0 }
0x1277   :  { %v3757_v61 = vadd.f32 %v2633_v54, %v2319_v38  ;;  %v2326_v44 = vsel %vm132_vm0, %v3754_v60, 0.0 }
0x1278   :  { %2327 = vadd.xlane.f32.xlu1 %v2326_v44 }
0x1279   :  { %v2329_v62 = vsel %vm132_vm0, %v3757_v61, 0.0 }
0x127a   :  { %2330 = vadd.xlane.f32.xlu0 %v2329_v62 }
0x1305   :  { %v2328_v52 = vpop.xlane.xlu1 %2327 }
0x1306   :  { %v2332_v53 = vmul.f32 0.03125, %v2328_v52 }
0x1307   :  { %v2331_v0 = vpop.xlane.xlu0 %2330 }
0x1308   :  { %v2334_v63 = vsub.f32 %v3754_v60, %v2332_v53  ;;  %v2333_v2 = vmul.f32 0.03125, %v2331_v0 }
0x130a   :  { %v2335_v3 = vsub.f32 %v3757_v61, %v2333_v2  ;;  %v2336_v56 = vmul.f32 %v2334_v63, %v2334_v63 }
0x130c   :  { %v2338_v48 = vsel %vm132_vm0, %v2336_v56, 0.0  ;;  %v2337_v51 = vmul.f32 %v2335_v3, %v2335_v3 }
0x130d   :  { %2339 = vadd.xlane.f32.xlu1 %v2338_v48 }
0x130e   :  { %v2341_v4 = vsel %vm132_vm0, %v2337_v51, 0.0 }
0x130f   :  { %2342 = vadd.xlane.f32.xlu0 %v2341_v4 }
0x139a   :  { %v2340_v55 = vpop.xlane.xlu1 %2339 }
0x139b   :  { %v2344_v13 = vmul.f32 0.03125, %v2340_v55 }
0x139c   :  { %v2343_v14 = vpop.xlane.xlu0 %2342 }
0x139d   :  { %v2346_v16 = vadd.f32 1e-05, %v2344_v13  ;;  %v2345_v17 = vmul.f32 0.03125, %v2343_v14 }
0x139f   :  { %3206 = vrsqrt.f32 %v2346_v16  ;;  %v2347_v18 = vadd.f32 1e-05, %v2345_v17 }
0x13a1   :  { %3208 = vrsqrt.f32 %v2347_v18 }
0x13a9   :  { %v3207_v50 = vpop.eup %3206 }
0x13aa   :  { %v2350_v36 = vmul.f32 %v3207_v50, %v2334_v63 }
0x13ab   :  { %v3209_v19 = vpop.eup %3208 }
0x13ac   :  { %v2356_v20 = vmul.f32 %v2634_v37, %v2350_v36  ;;  %v2351_v40 = vmul.f32 %v3209_v19, %v2335_v3 }
0x13ae   :  { %v2357_v43 = vmul.f32 %v2634_v37, %v2351_v40  ;;  %v2362_v22 = vadd.f32 %v2635_v21, %v2356_v20 }
0x13b0   :  { %v2363_v24 = vadd.f32 %v2635_v21, %v2357_v43 }
0x13b2   :  { %v2364_v25 = vpack.c.bf16 %v2363_v24, %v2362_v22 }
0x13b4   :  { %2926 = vmatmul.mubr.msk.bf16.vlgmr.msra.gmra.mrb[20].mxu1 %vm132_vm0, %v2364_v25 }
0x1487   :  { %v2418_v30 = vpop.f32.mrb[20].mxu1 }
0x1488   :  { %v2419_v31 = vadd.f32 %v2636_v29, %v2418_v30  ;;  %v2927_v32 = vpop.f32.mrb[21].mxu1 }
0x1489   :  { %v2421_v33 = vpop.f32.mrb[22].mxu1 }
0x148a   :  { %v2422_v41 = vadd.f32 %v2636_v29, %v2421_v33  ;;  %v2928_v42 = vpop.f32.mrb[23].mxu1  ;;  %v2425_v49 = vmax.f32 %v2419_v31, 0.0 }
0x148c   :  { %v2426_v46 = vmax.f32 %v2422_v41, 0.0 }
0x148e   :  { %v2427_v27 = vpack.c.bf16 %v2426_v46, %v2425_v49 }
0x1490   :  { %2946 = vmatmul.mubr.bf16.vlgmr.msra.gmra.mrb[24].mxu0 %v2427_v27 }
0x1563   :  { %v2510_v1 = vpop.f32.mrb[24].mxu0 }
0x1564   :  { %v2517_v15 = vadd.f32 %v2510_v1, %v3754_v60  ;;  %v2947_v57 = vpop.f32.mrb[25].mxu0 }
0x1565   :  { %v2513_v58 = vpop.f32.mrb[26].mxu0 }
0x1566   :  { %v2523_v47 = vadd.f32 %v2648_v35, %v2517_v15  ;;  %v2518_v54 = vadd.f32 %v2513_v58, %v3757_v61  ;;  %v2948_v34 = vpop.f32.mrb[27].mxu0 }
0x1568   :  { %2525 = vst.msk [vmem:[#allocation8] sm:$0xff] %vm132_vm0, %v2523_v47  ;;  %v2524_v45 = vadd.f32 %v2648_v35, %v2518_v54 }
0x156a   :  { %2526 = vst.msk [vmem:[#allocation8 + $0x8] sm:$0xff] %vm132_vm0, %v2524_v45 }
0x156b   :  { %3287 = shalt.err (!%p3284_p0)
}
0x156c   :  { %s3288_s14 = scalar_lea.hbm %s3802_s4, 256 }
0x156d   :  { %p3289_p1 = scmp.ne.s32.totalorder %s3802_s4, %s3288_s14  ;;  %p3292_p2 = scmp.lt.u32.totalorder %s3288_s14, %s3802_s4 }
0x156f   :  { %p3294_p3 = pnand %p3292_p2, %p3289_p1 }
0x1571   :  { %3297 = shalt.err (!%p3294_p3)
}
0x1572   :  { %2538 = dma.vmem_to_hbm [thread:$0]  %s2533_s10, 256, %s3802_s4, [#allocation4], %s3308_s1, %s3308_s1, %s3309_s13  }
0x1573   :  { %3302 = dma.done.wait [#allocation4], 256  }
0x1574   :  { %3303 = vsyncadd [#allocation4], 4294967040 }
0x1575   :  { %2542 = vsyncpa [#allocation3], 1 }
0x1576   :  { %2543 = vsyncpa [#allocation6], 1 }
0x1577   :  { %2544 = vsyncpa [#allocation4], 1 }

</bundles_post_ra>
